<compile_context>
chip_gen: v7x
topology: tpu7x:2x2x1
jax: 0.10.0
libtpu: 0.0.40
codegen_flags: <defaults>
</compile_context>

<pallas_src>
import jax
import jax.numpy as jnp
from jax.experimental import pallas as pl
from jax.experimental.pallas import tpu as pltpu


def _round_up(x, m):
    return ((x + m - 1) // m) * m


def _make_decoder_kernel(dim, num_blocks, has_z, has_c, leaky, mm_dtype):
    """Builds the fused decoder kernel body (traced once, fully unrolled)."""

    def final_act(v):
        # Decoder.actvn (only used before fc_out); blocks always use ReLU.
        return jnp.where(v > 0, v, 0.2 * v) if leaky else jnp.maximum(v, 0.0)

    def kernel(*refs):
        it = iter(refs)
        p_ref = next(it)                             # (tm, dim)        f32
        z_ref = next(it) if has_z else None          # (1, z_dim)       f32
        c_ref = next(it) if has_c else None          # (1, c_dim)       f32
        wp_ref, bp_ref = next(it), next(it)          # (dim, H), (1, H) f32
        if has_z:
            wz_ref, bz_ref = next(it), next(it)      # (z_dim, H) mm, (1, H) f32
        if has_c:
            wc_ref, bc_ref = next(it), next(it)      # (c_dim, H) mm, (1, H) f32
        w0s_ref, b0s_ref = next(it), next(it)        # (NB, H, H) mm, (NB,1,H) f32
        w1s_ref, b1s_ref = next(it), next(it)        # (NB, H, H) mm, (NB,1,H) f32
        wout_ref, bout_ref = next(it), next(it)      # (H, Npad) mm, (1, Npad) f32
        o_ref = next(it)                             # (tm, out_dim)

        f32 = jnp.float32
        tm = p_ref.shape[0]
        hidden = wp_ref.shape[1]

        # Per-batch conditioning: fc_p bias + fc_z(z) + fc_c(c)  -> (1, H).
        cond = bp_ref[...].astype(f32)
        if has_z:
            cond = cond + jnp.dot(z_ref[...].astype(mm_dtype), wz_ref[...],
                                  preferred_element_type=f32)
            cond = cond + bz_ref[...].astype(f32)
        if has_c:
            cond = cond + jnp.dot(c_ref[...].astype(mm_dtype), wc_ref[...],
                                  preferred_element_type=f32)
            cond = cond + bc_ref[...].astype(f32)

        # fc_p(p): contraction is tiny (dim=3) -> unrolled VPU rank-1 updates.
        p = p_ref[...].astype(f32)                   # (tm, dim)
        net = jnp.broadcast_to(cond, (tm, hidden))
        for k in range(dim):
            net = net + p[:, k:k + 1] * wp_ref[k:k + 1, :].astype(f32)

        # num_blocks x ResnetBlockFC(hidden): identity shortcut, ReLU inside.
        # Residual stream stays f32; only matmul operands are cast to mm_dtype.
        for i in range(num_blocks):
            h = jnp.maximum(net, 0.0).astype(mm_dtype)
            t = jnp.dot(h, w0s_ref[i], preferred_element_type=f32)
            t = jnp.maximum(t + b0s_ref[i].astype(f32), 0.0).astype(mm_dtype)
            dx = jnp.dot(t, w1s_ref[i], preferred_element_type=f32)
            net = net + dx + b1s_ref[i].astype(f32)

        # fc_out(actvn(net)): lane-dense (N padded to 128) matmul; store only
        # the real out_dim columns -> HBM write traffic stays out_dim-wide.
        h = final_act(net).astype(mm_dtype)
        out = jnp.dot(h, wout_ref[...], preferred_element_type=f32)
        out = out + bout_ref[...].astype(f32)
        o_ref[...] = out[:, : o_ref.shape[1]].astype(o_ref.dtype)

    return kernel


def decoder_forward(p, z, c, params, *, row_tile=512,
                    matmul_dtype=jnp.bfloat16, leaky=False, interpret=False):
    """Fused Decoder forward.  Returns [B, T] (or [B, T, out_dim] if >1)."""
    wp = params["wp"]
    dim, hidden = wp.shape
    num_blocks = params["w0"].shape[0]
    wout = params["wout"]
    out_dim = wout.shape[1]
    has_z, has_c = z is not None, c is not None
    f32, mm = jnp.float32, matmul_dtype

    B = p.shape[0]
    p3 = p.reshape(B, -1, dim).astype(f32)
    T = p3.shape[1]

    # Row tile: big for real workloads, clamped for tiny T; ceil-div grid with
    # zero row padding (no "tm = M" fallback -> bounded VMEM on v7x too).
    assert row_tile % 8 == 0 and row_tile >= 8
    tm = min(row_tile, _round_up(T, 8))
    T_pad = _round_up(T, tm)
    if T_pad != T:
        p3 = jnp.pad(p3, ((0, 0), (0, T_pad - T), (0, 0)))

    n_pad = _round_up(out_dim, 128)   # lane-dense N for the fc_out matmul

    # ---- pack operands (weights resident in VMEM via constant index_maps) --
    args = [p3]
    in_specs = [pl.BlockSpec((None, tm, dim), lambda b, j: (b, j, 0))]
    if has_z:
        z3 = z.reshape(B, 1, -1).astype(f32)
        args.append(z3)
        in_specs.append(pl.BlockSpec((None, 1, z3.shape[-1]),
                                     lambda b, j: (b, 0, 0)))
    if has_c:
        c3 = c.reshape(B, 1, -1).astype(f32)
        args.append(c3)
        in_specs.append(pl.BlockSpec((None, 1, c3.shape[-1]),
                                     lambda b, j: (b, 0, 0)))

    def full2(a):
        args.append(a)
        in_specs.append(pl.BlockSpec(a.shape, lambda b, j: (0, 0)))

    def full3(a):
        args.append(a)
        in_specs.append(pl.BlockSpec(a.shape, lambda b, j: (0, 0, 0)))

    full2(wp.astype(f32))                                   # VPU path -> f32
    full2(params["bp"].reshape(1, hidden).astype(f32))
    if has_z:
        full2(params["wz"].astype(mm))
        full2(params["bz"].reshape(1, hidden).astype(f32))
    if has_c:
        full2(params["wc"].astype(mm))
        full2(params["bc"].reshape(1, hidden).astype(f32))
    full3(params["w0"].astype(mm))
    full3(params["b0"].reshape(num_blocks, 1, hidden).astype(f32))
    full3(params["w1"].astype(mm))
    full3(params["b1"].reshape(num_blocks, 1, hidden).astype(f32))
    wout_p = jnp.zeros((hidden, n_pad), mm).at[:, :out_dim].set(wout.astype(mm))
    bout_p = jnp.zeros((1, n_pad), f32).at[:, :out_dim].set(
        params["bout"].reshape(1, out_dim).astype(f32))
    full2(wout_p)
    full2(bout_p)

    out_spec = pl.BlockSpec((None, tm, out_dim), lambda b, j: (b, j, 0))
    kernel = _make_decoder_kernel(dim, num_blocks, has_z, has_c, leaky, mm)
    grid = (B, T_pad // tm)

    # Advisory cost estimate so XLA schedules around the custom call sensibly.
    m_rows = B * T_pad
    flops = 2 * m_rows * (dim * hidden + num_blocks * 2 * hidden * hidden
                          + hidden * n_pad)
    bytes_accessed = int(p3.size * 4 + m_rows * out_dim * 4
                         + sum(int(a.size) * a.dtype.itemsize for a in args[1:]))

    out = pl.pallas_call(
        kernel,
        out_shape=jax.ShapeDtypeStruct((B, T_pad, out_dim), jnp.float32),
        grid_spec=pltpu.PrefetchScalarGridSpec(
            num_scalar_prefetch=0,
            grid=grid,
            in_specs=in_specs,
            out_specs=out_spec,
        ),
        compiler_params=pltpu.CompilerParams(
            # Disjoint output rows per step -> shardable across v7x's 2 TCs;
            # harmless on single-TC v5e/v6e.  VMEM footprint (resident weights
            # + one tm x hidden f32 stream + tiny p/out blocks) is ~2-3 MiB,
            # well inside the default scoped VMEM on all generations, so no
            # explicit vmem_limit_bytes is needed even at row_tile=1024.
            dimension_semantics=("parallel", "parallel"),
        ),
        cost_estimate=pl.CostEstimate(flops=flops, transcendentals=0,
                                      bytes_accessed=bytes_accessed),
        interpret=interpret,
    )(*args)

    out = out[:, :T, :]
    if out_dim == 1:
        out = out[..., 0]          # mirrors torch `out.squeeze(-1)`
    return out


def init_decoder_params(key, dim=3, z_dim=128, c_dim=128, hidden=128,
                        out_dim=1, num_blocks=5):
    """Random parameters in JAX layout (weights are [in, out]).

    Note: the PyTorch module zero-initializes every block's fc_1 weight; here
    all weights are random so the kernel math is actually exercised (the
    forward-pass semantics do not depend on init values).
    """
    def linear(k, fan_in, fan_out):
        kw, kb = jax.random.split(k)
        s = 1.0 / (fan_in ** 0.5)
        w = jax.random.uniform(kw, (fan_in, fan_out), jnp.float32, -s, s)
        b = jax.random.uniform(kb, (fan_out,), jnp.float32, -s, s)
        return w, b

    keys = iter(jax.random.split(key, 4 + 2 * num_blocks))
    params = {}
    params["wp"], params["bp"] = linear(next(keys), dim, hidden)
    if z_dim:
        params["wz"], params["bz"] = linear(next(keys), z_dim, hidden)
    if c_dim:
        params["wc"], params["bc"] = linear(next(keys), c_dim, hidden)
    w0s, b0s, w1s, b1s = [], [], [], []
    for _ in range(num_blocks):
        w0, b0 = linear(next(keys), hidden, hidden)
        w1, b1 = linear(next(keys), hidden, hidden)
        w0s.append(w0); b0s.append(b0); w1s.append(w1); b1s.append(b1)
    params["w0"], params["b0"] = jnp.stack(w0s), jnp.stack(b0s)
    params["w1"], params["b1"] = jnp.stack(w1s), jnp.stack(b1s)
    params["wout"], params["bout"] = linear(next(keys), hidden, out_dim)
    return params


def decoder_reference(p, z, c, params, *, leaky=False):
    """Pure-JAX float32 reference mirroring the PyTorch forward."""
    hi = jax.lax.Precision.HIGHEST
    mm = lambda a, b: jnp.dot(a, b, precision=hi)
    dim = params["wp"].shape[0]
    B = p.shape[0]
    x = p.reshape(B, -1, dim).astype(jnp.float32)
    net = mm(x, params["wp"]) + params["bp"]
    if z is not None:
        net = net + (mm(z, params["wz"]) + params["bz"])[:, None, :]
    if c is not None:
        net = net + (mm(c, params["wc"]) + params["bc"])[:, None, :]
    for i in range(params["w0"].shape[0]):
        h = jnp.maximum(net, 0.0)
        t = jnp.maximum(mm(h, params["w0"][i]) + params["b0"][i], 0.0)
        net = net + mm(t, params["w1"][i]) + params["b1"][i]
    h = jnp.where(net > 0, net, 0.2 * net) if leaky else jnp.maximum(net, 0.0)
    out = mm(h, params["wout"]) + params["bout"]
    return out[..., 0] if out.shape[-1] == 1 else out


if __name__ == "__main__":
    key = jax.random.PRNGKey(0)
    kp, kz, kc, kw = jax.random.split(key, 4)

    # Small, module-consistent shapes: batch=2, 37 query points (exercises the
    # zero-padded last row tile), dim=3, z_dim=c_dim=hidden=128, out_dim=1.
    B, T, dim, z_dim, c_dim, hidden = 2, 37, 3, 128, 128, 128
    p = jax.random.normal(kp, (B, T, dim), jnp.float32)
    z = jax.random.normal(kz, (B, z_dim), jnp.float32)
    c = jax.random.normal(kc, (B, c_dim), jnp.float32)
    params = init_decoder_params(kw, dim=dim, z_dim=z_dim, c_dim=c_dim,
                                 hidden=hidden, out_dim=1)

    ref = decoder_reference(p, z, c, params)

    # Full-precision matmul path.
    out_f32 = jax.block_until_ready(
        decoder_forward(p, z, c, params, matmul_dtype=jnp.float32))
    assert out_f32.shape == (B, T)
    assert jnp.allclose(out_f32, ref, atol=3e-2, rtol=3e-2), (
        float(jnp.max(jnp.abs(out_f32 - ref))))

    # Default bf16-matmul path (f32 accumulation / f32 residual stream).
    out_bf16 = jax.block_until_ready(decoder_forward(p, z, c, params))
    assert out_bf16.shape == (B, T)
    assert jnp.allclose(out_bf16, ref, atol=1e-1, rtol=1e-1), (
        float(jnp.max(jnp.abs(out_bf16 - ref))))

    print("KERNEL_OK")
</pallas_src>

<mosaic_0001>
module attributes {stable_mosaic.version = 11 : i64} {
  func.func @kernel(%arg0: i32, %arg1: i32, %arg2: memref<1x40x3xf32, #tpu.memory_space<vmem>>, %arg3: memref<1x1x128xf32, #tpu.memory_space<vmem>>, %arg4: memref<1x1x128xf32, #tpu.memory_space<vmem>>, %arg5: memref<3x128xf32, #tpu.memory_space<vmem>>, %arg6: memref<1x128xf32, #tpu.memory_space<vmem>>, %arg7: memref<128x128xf32, #tpu.memory_space<vmem>>, %arg8: memref<1x128xf32, #tpu.memory_space<vmem>>, %arg9: memref<128x128xf32, #tpu.memory_space<vmem>>, %arg10: memref<1x128xf32, #tpu.memory_space<vmem>>, %arg11: memref<5x128x128xf32, #tpu.memory_space<vmem>>, %arg12: memref<5x1x128xf32, #tpu.memory_space<vmem>>, %arg13: memref<5x128x128xf32, #tpu.memory_space<vmem>>, %arg14: memref<5x1x128xf32, #tpu.memory_space<vmem>>, %arg15: memref<128x128xf32, #tpu.memory_space<vmem>>, %arg16: memref<1x128xf32, #tpu.memory_space<vmem>>, %arg17: memref<1x40x1xf32, #tpu.memory_space<vmem>>) attributes {dimension_semantics = [#tpu.dimension_semantics<parallel>, #tpu.dimension_semantics<parallel>], iteration_bounds = array<i64: 2, 1>, scalar_prefetch = 0 : i64, scratch_operands = 0 : i64, tpu.core_type = #tpu.core_type<tc>, window_params = [{transform_indices = @transform_0, window_bounds = array<i64: 1, 40, 3>}, {transform_indices = @transform_1, window_bounds = array<i64: 1, 1, 128>}, {transform_indices = @transform_2, window_bounds = array<i64: 1, 1, 128>}, {pipeline_mode = #tpu.pipeline_mode<synchronous>, transform_indices = @transform_3, window_bounds = array<i64: 3, 128>}, {pipeline_mode = #tpu.pipeline_mode<synchronous>, transform_indices = @transform_4, window_bounds = array<i64: 1, 128>}, {pipeline_mode = #tpu.pipeline_mode<synchronous>, transform_indices = @transform_5, window_bounds = array<i64: 128, 128>}, {pipeline_mode = #tpu.pipeline_mode<synchronous>, transform_indices = @transform_6, window_bounds = array<i64: 1, 128>}, {pipeline_mode = #tpu.pipeline_mode<synchronous>, transform_indices = @transform_7, window_bounds = array<i64: 128, 128>}, {pipeline_mode = #tpu.pipeline_mode<synchronous>, transform_indices = @transform_8, window_bounds = array<i64: 1, 128>}, {pipeline_mode = #tpu.pipeline_mode<synchronous>, transform_indices = @transform_9, window_bounds = array<i64: 5, 128, 128>}, {pipeline_mode = #tpu.pipeline_mode<synchronous>, transform_indices = @transform_10, window_bounds = array<i64: 5, 1, 128>}, {pipeline_mode = #tpu.pipeline_mode<synchronous>, transform_indices = @transform_11, window_bounds = array<i64: 5, 128, 128>}, {pipeline_mode = #tpu.pipeline_mode<synchronous>, transform_indices = @transform_12, window_bounds = array<i64: 5, 1, 128>}, {pipeline_mode = #tpu.pipeline_mode<synchronous>, transform_indices = @transform_13, window_bounds = array<i64: 128, 128>}, {pipeline_mode = #tpu.pipeline_mode<synchronous>, transform_indices = @transform_14, window_bounds = array<i64: 1, 128>}, {transform_indices = @transform_15, window_bounds = array<i64: 1, 40, 1>}]} {
    %c0 = arith.constant 0 : index
    %c0_0 = arith.constant 0 : index
    %0 = vector.load %arg6[%c0, %c0_0] : memref<1x128xf32, #tpu.memory_space<vmem>>, vector<1x128xf32>
    %c0_1 = arith.constant 0 : index
    %c0_2 = arith.constant 0 : index
    %c0_3 = arith.constant 0 : index
    %1 = vector.load %arg3[%c0_1, %c0_2, %c0_3] : memref<1x1x128xf32, #tpu.memory_space<vmem>>, vector<1x1x128xf32>
    %2 = vector.shape_cast %1 : vector<1x1x128xf32> to vector<1x128xf32>
    %c0_4 = arith.constant 0 : index
    %c0_5 = arith.constant 0 : index
    %3 = vector.load %arg7[%c0_4, %c0_5] : memref<128x128xf32, #tpu.memory_space<vmem>>, vector<128x128xf32>
    %cst = arith.constant dense<0.000000e+00> : vector<1x128xf32>
    %4 = tpu.matmul %2, %3, %cst {dimension_numbers = #tpu.dot_dimension_numbers<[1], [0], [0], [1], [0, 0, 1, 1], [], []>} : vector<1x128xf32>, vector<128x128xf32>, vector<1x128xf32> -> vector<1x128xf32>
    %5 = arith.addf %0, %4 : vector<1x128xf32>
    %c0_6 = arith.constant 0 : index
    %c0_7 = arith.constant 0 : index
    %6 = vector.load %arg8[%c0_6, %c0_7] : memref<1x128xf32, #tpu.memory_space<vmem>>, vector<1x128xf32>
    %7 = arith.addf %5, %6 : vector<1x128xf32>
    %c0_8 = arith.constant 0 : index
    %c0_9 = arith.constant 0 : index
    %c0_10 = arith.constant 0 : index
    %8 = vector.load %arg4[%c0_8, %c0_9, %c0_10] : memref<1x1x128xf32, #tpu.memory_space<vmem>>, vector<1x1x128xf32>
    %9 = vector.shape_cast %8 : vector<1x1x128xf32> to vector<1x128xf32>
    %c0_11 = arith.constant 0 : index
    %c0_12 = arith.constant 0 : index
    %10 = vector.load %arg9[%c0_11, %c0_12] : memref<128x128xf32, #tpu.memory_space<vmem>>, vector<128x128xf32>
    %cst_13 = arith.constant dense<0.000000e+00> : vector<1x128xf32>
    %11 = tpu.matmul %9, %10, %cst_13 {dimension_numbers = #tpu.dot_dimension_numbers<[1], [0], [0], [1], [0, 0, 1, 1], [], []>} : vector<1x128xf32>, vector<128x128xf32>, vector<1x128xf32> -> vector<1x128xf32>
    %12 = arith.addf %7, %11 : vector<1x128xf32>
    %c0_14 = arith.constant 0 : index
    %c0_15 = arith.constant 0 : index
    %13 = vector.load %arg10[%c0_14, %c0_15] : memref<1x128xf32, #tpu.memory_space<vmem>>, vector<1x128xf32>
    %14 = arith.addf %12, %13 : vector<1x128xf32>
    %c0_16 = arith.constant 0 : index
    %c0_17 = arith.constant 0 : index
    %c0_18 = arith.constant 0 : index
    %15 = vector.load %arg2[%c0_16, %c0_17, %c0_18] : memref<1x40x3xf32, #tpu.memory_space<vmem>>, vector<1x40x3xf32>
    %16 = vector.shape_cast %15 : vector<1x40x3xf32> to vector<40x3xf32>
    %17 = vector.shape_cast %14 : vector<1x128xf32> to vector<1x128xf32>
    %18 = vector.broadcast %17 : vector<1x128xf32> to vector<40x128xf32>
    %19 = vector.extract_strided_slice %16 {offsets = [0, 0], sizes = [40, 1], strides = [1, 1]} : vector<40x3xf32> to vector<40x1xf32>
    %c0_19 = arith.constant 0 : index
    %c0_20 = arith.constant 0 : index
    %20 = vector.load %arg5[%c0_19, %c0_20] : memref<3x128xf32, #tpu.memory_space<vmem>>, vector<1x128xf32>
    %21 = vector.broadcast %19 : vector<40x1xf32> to vector<40x128xf32>
    %22 = vector.broadcast %20 : vector<1x128xf32> to vector<40x128xf32>
    %23 = arith.mulf %21, %22 : vector<40x128xf32>
    %24 = arith.addf %18, %23 : vector<40x128xf32>
    %25 = vector.extract_strided_slice %16 {offsets = [0, 1], sizes = [40, 1], strides = [1, 1]} : vector<40x3xf32> to vector<40x1xf32>
    %c1 = arith.constant 1 : index
    %c0_21 = arith.constant 0 : index
    %26 = vector.load %arg5[%c1, %c0_21] : memref<3x128xf32, #tpu.memory_space<vmem>>, vector<1x128xf32>
    %27 = vector.broadcast %25 : vector<40x1xf32> to vector<40x128xf32>
    %28 = vector.broadcast %26 : vector<1x128xf32> to vector<40x128xf32>
    %29 = arith.mulf %27, %28 : vector<40x128xf32>
    %30 = arith.addf %24, %29 : vector<40x128xf32>
    %31 = vector.extract_strided_slice %16 {offsets = [0, 2], sizes = [40, 1], strides = [1, 1]} : vector<40x3xf32> to vector<40x1xf32>
    %c2 = arith.constant 2 : index
    %c0_22 = arith.constant 0 : index
    %32 = vector.load %arg5[%c2, %c0_22] : memref<3x128xf32, #tpu.memory_space<vmem>>, vector<1x128xf32>
    %33 = vector.broadcast %31 : vector<40x1xf32> to vector<40x128xf32>
    %34 = vector.broadcast %32 : vector<1x128xf32> to vector<40x128xf32>
    %35 = arith.mulf %33, %34 : vector<40x128xf32>
    %36 = arith.addf %30, %35 : vector<40x128xf32>
    %cst_23 = arith.constant 0.000000e+00 : f32
    %37 = vector.broadcast %cst_23 : f32 to vector<40x128xf32>
    %38 = arith.maximumf %36, %37 : vector<40x128xf32>
    %c0_24 = arith.constant 0 : index
    %c0_25 = arith.constant 0 : index
    %c0_26 = arith.constant 0 : index
    %39 = vector.load %arg11[%c0_24, %c0_25, %c0_26] : memref<5x128x128xf32, #tpu.memory_space<vmem>>, vector<1x128x128xf32>
    %40 = vector.shape_cast %39 : vector<1x128x128xf32> to vector<128x128xf32>
    %cst_27 = arith.constant dense<0.000000e+00> : vector<40x128xf32>
    %41 = tpu.matmul %38, %40, %cst_27 {dimension_numbers = #tpu.dot_dimension_numbers<[1], [0], [0], [1], [0, 0, 1, 1], [], []>} : vector<40x128xf32>, vector<128x128xf32>, vector<40x128xf32> -> vector<40x128xf32>
    %c0_28 = arith.constant 0 : index
    %c0_29 = arith.constant 0 : index
    %c0_30 = arith.constant 0 : index
    %42 = vector.load %arg12[%c0_28, %c0_29, %c0_30] : memref<5x1x128xf32, #tpu.memory_space<vmem>>, vector<1x1x128xf32>
    %43 = vector.shape_cast %42 : vector<1x1x128xf32> to vector<1x128xf32>
    %44 = vector.broadcast %43 : vector<1x128xf32> to vector<40x128xf32>
    %45 = arith.addf %41, %44 : vector<40x128xf32>
    %cst_31 = arith.constant 0.000000e+00 : f32
    %46 = vector.broadcast %cst_31 : f32 to vector<40x128xf32>
    %47 = arith.maximumf %45, %46 : vector<40x128xf32>
    %c0_32 = arith.constant 0 : index
    %c0_33 = arith.constant 0 : index
    %c0_34 = arith.constant 0 : index
    %48 = vector.load %arg13[%c0_32, %c0_33, %c0_34] : memref<5x128x128xf32, #tpu.memory_space<vmem>>, vector<1x128x128xf32>
    %49 = vector.shape_cast %48 : vector<1x128x128xf32> to vector<128x128xf32>
    %cst_35 = arith.constant dense<0.000000e+00> : vector<40x128xf32>
    %50 = tpu.matmul %47, %49, %cst_35 {dimension_numbers = #tpu.dot_dimension_numbers<[1], [0], [0], [1], [0, 0, 1, 1], [], []>} : vector<40x128xf32>, vector<128x128xf32>, vector<40x128xf32> -> vector<40x128xf32>
    %51 = arith.addf %36, %50 : vector<40x128xf32>
    %c0_36 = arith.constant 0 : index
    %c0_37 = arith.constant 0 : index
    %c0_38 = arith.constant 0 : index
    %52 = vector.load %arg14[%c0_36, %c0_37, %c0_38] : memref<5x1x128xf32, #tpu.memory_space<vmem>>, vector<1x1x128xf32>
    %53 = vector.shape_cast %52 : vector<1x1x128xf32> to vector<1x128xf32>
    %54 = vector.broadcast %53 : vector<1x128xf32> to vector<40x128xf32>
    %55 = arith.addf %51, %54 : vector<40x128xf32>
    %cst_39 = arith.constant 0.000000e+00 : f32
    %56 = vector.broadcast %cst_39 : f32 to vector<40x128xf32>
    %57 = arith.maximumf %55, %56 : vector<40x128xf32>
    %c1_40 = arith.constant 1 : index
    %c0_41 = arith.constant 0 : index
    %c0_42 = arith.constant 0 : index
    %58 = vector.load %arg11[%c1_40, %c0_41, %c0_42] : memref<5x128x128xf32, #tpu.memory_space<vmem>>, vector<1x128x128xf32>
    %59 = vector.shape_cast %58 : vector<1x128x128xf32> to vector<128x128xf32>
    %cst_43 = arith.constant dense<0.000000e+00> : vector<40x128xf32>
    %60 = tpu.matmul %57, %59, %cst_43 {dimension_numbers = #tpu.dot_dimension_numbers<[1], [0], [0], [1], [0, 0, 1, 1], [], []>} : vector<40x128xf32>, vector<128x128xf32>, vector<40x128xf32> -> vector<40x128xf32>
    %c1_44 = arith.constant 1 : index
    %c0_45 = arith.constant 0 : index
    %c0_46 = arith.constant 0 : index
    %61 = vector.load %arg12[%c1_44, %c0_45, %c0_46] : memref<5x1x128xf32, #tpu.memory_space<vmem>>, vector<1x1x128xf32>
    %62 = vector.shape_cast %61 : vector<1x1x128xf32> to vector<1x128xf32>
    %63 = vector.broadcast %62 : vector<1x128xf32> to vector<40x128xf32>
    %64 = arith.addf %60, %63 : vector<40x128xf32>
    %cst_47 = arith.constant 0.000000e+00 : f32
    %65 = vector.broadcast %cst_47 : f32 to vector<40x128xf32>
    %66 = arith.maximumf %64, %65 : vector<40x128xf32>
    %c1_48 = arith.constant 1 : index
    %c0_49 = arith.constant 0 : index
    %c0_50 = arith.constant 0 : index
    %67 = vector.load %arg13[%c1_48, %c0_49, %c0_50] : memref<5x128x128xf32, #tpu.memory_space<vmem>>, vector<1x128x128xf32>
    %68 = vector.shape_cast %67 : vector<1x128x128xf32> to vector<128x128xf32>
    %cst_51 = arith.constant dense<0.000000e+00> : vector<40x128xf32>
    %69 = tpu.matmul %66, %68, %cst_51 {dimension_numbers = #tpu.dot_dimension_numbers<[1], [0], [0], [1], [0, 0, 1, 1], [], []>} : vector<40x128xf32>, vector<128x128xf32>, vector<40x128xf32> -> vector<40x128xf32>
    %70 = arith.addf %55, %69 : vector<40x128xf32>
    %c1_52 = arith.constant 1 : index
    %c0_53 = arith.constant 0 : index
    %c0_54 = arith.constant 0 : index
    %71 = vector.load %arg14[%c1_52, %c0_53, %c0_54] : memref<5x1x128xf32, #tpu.memory_space<vmem>>, vector<1x1x128xf32>
    %72 = vector.shape_cast %71 : vector<1x1x128xf32> to vector<1x128xf32>
    %73 = vector.broadcast %72 : vector<1x128xf32> to vector<40x128xf32>
    %74 = arith.addf %70, %73 : vector<40x128xf32>
    %cst_55 = arith.constant 0.000000e+00 : f32
    %75 = vector.broadcast %cst_55 : f32 to vector<40x128xf32>
    %76 = arith.maximumf %74, %75 : vector<40x128xf32>
    %c2_56 = arith.constant 2 : index
    %c0_57 = arith.constant 0 : index
    %c0_58 = arith.constant 0 : index
    %77 = vector.load %arg11[%c2_56, %c0_57, %c0_58] : memref<5x128x128xf32, #tpu.memory_space<vmem>>, vector<1x128x128xf32>
    %78 = vector.shape_cast %77 : vector<1x128x128xf32> to vector<128x128xf32>
    %cst_59 = arith.constant dense<0.000000e+00> : vector<40x128xf32>
    %79 = tpu.matmul %76, %78, %cst_59 {dimension_numbers = #tpu.dot_dimension_numbers<[1], [0], [0], [1], [0, 0, 1, 1], [], []>} : vector<40x128xf32>, vector<128x128xf32>, vector<40x128xf32> -> vector<40x128xf32>
    %c2_60 = arith.constant 2 : index
    %c0_61 = arith.constant 0 : index
    %c0_62 = arith.constant 0 : index
    %80 = vector.load %arg12[%c2_60, %c0_61, %c0_62] : memref<5x1x128xf32, #tpu.memory_space<vmem>>, vector<1x1x128xf32>
    %81 = vector.shape_cast %80 : vector<1x1x128xf32> to vector<1x128xf32>
    %82 = vector.broadcast %81 : vector<1x128xf32> to vector<40x128xf32>
    %83 = arith.addf %79, %82 : vector<40x128xf32>
    %cst_63 = arith.constant 0.000000e+00 : f32
    %84 = vector.broadcast %cst_63 : f32 to vector<40x128xf32>
    %85 = arith.maximumf %83, %84 : vector<40x128xf32>
    %c2_64 = arith.constant 2 : index
    %c0_65 = arith.constant 0 : index
    %c0_66 = arith.constant 0 : index
    %86 = vector.load %arg13[%c2_64, %c0_65, %c0_66] : memref<5x128x128xf32, #tpu.memory_space<vmem>>, vector<1x128x128xf32>
    %87 = vector.shape_cast %86 : vector<1x128x128xf32> to vector<128x128xf32>
    %cst_67 = arith.constant dense<0.000000e+00> : vector<40x128xf32>
    %88 = tpu.matmul %85, %87, %cst_67 {dimension_numbers = #tpu.dot_dimension_numbers<[1], [0], [0], [1], [0, 0, 1, 1], [], []>} : vector<40x128xf32>, vector<128x128xf32>, vector<40x128xf32> -> vector<40x128xf32>
    %89 = arith.addf %74, %88 : vector<40x128xf32>
    %c2_68 = arith.constant 2 : index
    %c0_69 = arith.constant 0 : index
    %c0_70 = arith.constant 0 : index
    %90 = vector.load %arg14[%c2_68, %c0_69, %c0_70] : memref<5x1x128xf32, #tpu.memory_space<vmem>>, vector<1x1x128xf32>
    %91 = vector.shape_cast %90 : vector<1x1x128xf32> to vector<1x128xf32>
    %92 = vector.broadcast %91 : vector<1x128xf32> to vector<40x128xf32>
    %93 = arith.addf %89, %92 : vector<40x128xf32>
    %cst_71 = arith.constant 0.000000e+00 : f32
    %94 = vector.broadcast %cst_71 : f32 to vector<40x128xf32>
    %95 = arith.maximumf %93, %94 : vector<40x128xf32>
    %c3 = arith.constant 3 : index
    %c0_72 = arith.constant 0 : index
    %c0_73 = arith.constant 0 : index
    %96 = vector.load %arg11[%c3, %c0_72, %c0_73] : memref<5x128x128xf32, #tpu.memory_space<vmem>>, vector<1x128x128xf32>
    %97 = vector.shape_cast %96 : vector<1x128x128xf32> to vector<128x128xf32>
    %cst_74 = arith.constant dense<0.000000e+00> : vector<40x128xf32>
    %98 = tpu.matmul %95, %97, %cst_74 {dimension_numbers = #tpu.dot_dimension_numbers<[1], [0], [0], [1], [0, 0, 1, 1], [], []>} : vector<40x128xf32>, vector<128x128xf32>, vector<40x128xf32> -> vector<40x128xf32>
    %c3_75 = arith.constant 3 : index
    %c0_76 = arith.constant 0 : index
    %c0_77 = arith.constant 0 : index
    %99 = vector.load %arg12[%c3_75, %c0_76, %c0_77] : memref<5x1x128xf32, #tpu.memory_space<vmem>>, vector<1x1x128xf32>
    %100 = vector.shape_cast %99 : vector<1x1x128xf32> to vector<1x128xf32>
    %101 = vector.broadcast %100 : vector<1x128xf32> to vector<40x128xf32>
    %102 = arith.addf %98, %101 : vector<40x128xf32>
    %cst_78 = arith.constant 0.000000e+00 : f32
    %103 = vector.broadcast %cst_78 : f32 to vector<40x128xf32>
    %104 = arith.maximumf %102, %103 : vector<40x128xf32>
    %c3_79 = arith.constant 3 : index
    %c0_80 = arith.constant 0 : index
    %c0_81 = arith.constant 0 : index
    %105 = vector.load %arg13[%c3_79, %c0_80, %c0_81] : memref<5x128x128xf32, #tpu.memory_space<vmem>>, vector<1x128x128xf32>
    %106 = vector.shape_cast %105 : vector<1x128x128xf32> to vector<128x128xf32>
    %cst_82 = arith.constant dense<0.000000e+00> : vector<40x128xf32>
    %107 = tpu.matmul %104, %106, %cst_82 {dimension_numbers = #tpu.dot_dimension_numbers<[1], [0], [0], [1], [0, 0, 1, 1], [], []>} : vector<40x128xf32>, vector<128x128xf32>, vector<40x128xf32> -> vector<40x128xf32>
    %108 = arith.addf %93, %107 : vector<40x128xf32>
    %c3_83 = arith.constant 3 : index
    %c0_84 = arith.constant 0 : index
    %c0_85 = arith.constant 0 : index
    %109 = vector.load %arg14[%c3_83, %c0_84, %c0_85] : memref<5x1x128xf32, #tpu.memory_space<vmem>>, vector<1x1x128xf32>
    %110 = vector.shape_cast %109 : vector<1x1x128xf32> to vector<1x128xf32>
    %111 = vector.broadcast %110 : vector<1x128xf32> to vector<40x128xf32>
    %112 = arith.addf %108, %111 : vector<40x128xf32>
    %cst_86 = arith.constant 0.000000e+00 : f32
    %113 = vector.broadcast %cst_86 : f32 to vector<40x128xf32>
    %114 = arith.maximumf %112, %113 : vector<40x128xf32>
    %c4 = arith.constant 4 : index
    %c0_87 = arith.constant 0 : index
    %c0_88 = arith.constant 0 : index
    %115 = vector.load %arg11[%c4, %c0_87, %c0_88] : memref<5x128x128xf32, #tpu.memory_space<vmem>>, vector<1x128x128xf32>
    %116 = vector.shape_cast %115 : vector<1x128x128xf32> to vector<128x128xf32>
    %cst_89 = arith.constant dense<0.000000e+00> : vector<40x128xf32>
    %117 = tpu.matmul %114, %116, %cst_89 {dimension_numbers = #tpu.dot_dimension_numbers<[1], [0], [0], [1], [0, 0, 1, 1], [], []>} : vector<40x128xf32>, vector<128x128xf32>, vector<40x128xf32> -> vector<40x128xf32>
    %c4_90 = arith.constant 4 : index
    %c0_91 = arith.constant 0 : index
    %c0_92 = arith.constant 0 : index
    %118 = vector.load %arg12[%c4_90, %c0_91, %c0_92] : memref<5x1x128xf32, #tpu.memory_space<vmem>>, vector<1x1x128xf32>
    %119 = vector.shape_cast %118 : vector<1x1x128xf32> to vector<1x128xf32>
    %120 = vector.broadcast %119 : vector<1x128xf32> to vector<40x128xf32>
    %121 = arith.addf %117, %120 : vector<40x128xf32>
    %cst_93 = arith.constant 0.000000e+00 : f32
    %122 = vector.broadcast %cst_93 : f32 to vector<40x128xf32>
    %123 = arith.maximumf %121, %122 : vector<40x128xf32>
    %c4_94 = arith.constant 4 : index
    %c0_95 = arith.constant 0 : index
    %c0_96 = arith.constant 0 : index
    %124 = vector.load %arg13[%c4_94, %c0_95, %c0_96] : memref<5x128x128xf32, #tpu.memory_space<vmem>>, vector<1x128x128xf32>
    %125 = vector.shape_cast %124 : vector<1x128x128xf32> to vector<128x128xf32>
    %cst_97 = arith.constant dense<0.000000e+00> : vector<40x128xf32>
    %126 = tpu.matmul %123, %125, %cst_97 {dimension_numbers = #tpu.dot_dimension_numbers<[1], [0], [0], [1], [0, 0, 1, 1], [], []>} : vector<40x128xf32>, vector<128x128xf32>, vector<40x128xf32> -> vector<40x128xf32>
    %127 = arith.addf %112, %126 : vector<40x128xf32>
    %c4_98 = arith.constant 4 : index
    %c0_99 = arith.constant 0 : index
    %c0_100 = arith.constant 0 : index
    %128 = vector.load %arg14[%c4_98, %c0_99, %c0_100] : memref<5x1x128xf32, #tpu.memory_space<vmem>>, vector<1x1x128xf32>
    %129 = vector.shape_cast %128 : vector<1x1x128xf32> to vector<1x128xf32>
    %130 = vector.broadcast %129 : vector<1x128xf32> to vector<40x128xf32>
    %131 = arith.addf %127, %130 : vector<40x128xf32>
    %cst_101 = arith.constant 0.000000e+00 : f32
    %132 = vector.broadcast %cst_101 : f32 to vector<40x128xf32>
    %133 = arith.maximumf %131, %132 : vector<40x128xf32>
    %c0_102 = arith.constant 0 : index
    %c0_103 = arith.constant 0 : index
    %134 = vector.load %arg15[%c0_102, %c0_103] : memref<128x128xf32, #tpu.memory_space<vmem>>, vector<128x128xf32>
    %cst_104 = arith.constant dense<0.000000e+00> : vector<40x128xf32>
    %135 = tpu.matmul %133, %134, %cst_104 {dimension_numbers = #tpu.dot_dimension_numbers<[1], [0], [0], [1], [0, 0, 1, 1], [], []>} : vector<40x128xf32>, vector<128x128xf32>, vector<40x128xf32> -> vector<40x128xf32>
    %c0_105 = arith.constant 0 : index
    %c0_106 = arith.constant 0 : index
    %136 = vector.load %arg16[%c0_105, %c0_106] : memref<1x128xf32, #tpu.memory_space<vmem>>, vector<1x128xf32>
    %137 = vector.broadcast %136 : vector<1x128xf32> to vector<40x128xf32>
    %138 = arith.addf %135, %137 : vector<40x128xf32>
    %139 = vector.extract_strided_slice %138 {offsets = [0, 0], sizes = [40, 1], strides = [1, 1]} : vector<40x128xf32> to vector<40x1xf32>
    %c0_107 = arith.constant 0 : index
    %c0_108 = arith.constant 0 : index
    %c0_109 = arith.constant 0 : index
    %140 = vector.load %arg17[%c0_107, %c0_108, %c0_109] : memref<1x40x1xf32, #tpu.memory_space<vmem>>, vector<1x40x1xf32>
    %141 = vector.shape_cast %140 : vector<1x40x1xf32> to vector<40x1xf32>
    %142 = vector.shape_cast %139 : vector<40x1xf32> to vector<1x40x1xf32>
    tpu.vector_store %arg17[%c0_107, %c0_108, %c0_109], %142 {strides = array<i32>} : memref<1x40x1xf32, #tpu.memory_space<vmem>>, vector<1x40x1xf32>,
    return
  }
  func.func @transform_0(%arg0: i32, %arg1: i32) -> (i32, i32, i32) {
    %c0_i32 = arith.constant 0 : i32
    %c0_i32_0 = arith.constant 0 : i32
    return %arg0, %arg1, %c0_i32 : i32, i32, i32
  }
  func.func @transform_1(%arg0: i32, %arg1: i32) -> (i32, i32, i32) {
    %c0_i32 = arith.constant 0 : i32
    %c0_i32_0 = arith.constant 0 : i32
    %c0_i32_1 = arith.constant 0 : i32
    return %arg0, %c0_i32, %c0_i32_0 : i32, i32, i32
  }
  func.func @transform_2(%arg0: i32, %arg1: i32) -> (i32, i32, i32) {
    %c0_i32 = arith.constant 0 : i32
    %c0_i32_0 = arith.constant 0 : i32
    %c0_i32_1 = arith.constant 0 : i32
    return %arg0, %c0_i32, %c0_i32_0 : i32, i32, i32
  }
  func.func @transform_3(%arg0: i32, %arg1: i32) -> (i32, i32) {
    %c0_i32 = arith.constant 0 : i32
    %c0_i32_0 = arith.constant 0 : i32
    %c0_i32_1 = arith.constant 0 : i32
    return %c0_i32, %c0_i32_0 : i32, i32
  }
  func.func @transform_4(%arg0: i32, %arg1: i32) -> (i32, i32) {
    %c0_i32 = arith.constant 0 : i32
    %c0_i32_0 = arith.constant 0 : i32
    %c0_i32_1 = arith.constant 0 : i32
    return %c0_i32, %c0_i32_0 : i32, i32
  }
  func.func @transform_5(%arg0: i32, %arg1: i32) -> (i32, i32) {
    %c0_i32 = arith.constant 0 : i32
    %c0_i32_0 = arith.constant 0 : i32
    %c0_i32_1 = arith.constant 0 : i32
    return %c0_i32, %c0_i32_0 : i32, i32
  }
  func.func @transform_6(%arg0: i32, %arg1: i32) -> (i32, i32) {
    %c0_i32 = arith.constant 0 : i32
    %c0_i32_0 = arith.constant 0 : i32
    %c0_i32_1 = arith.constant 0 : i32
    return %c0_i32, %c0_i32_0 : i32, i32
  }
  func.func @transform_7(%arg0: i32, %arg1: i32) -> (i32, i32) {
    %c0_i32 = arith.constant 0 : i32
    %c0_i32_0 = arith.constant 0 : i32
    %c0_i32_1 = arith.constant 0 : i32
    return %c0_i32, %c0_i32_0 : i32, i32
  }
  func.func @transform_8(%arg0: i32, %arg1: i32) -> (i32, i32) {
    %c0_i32 = arith.constant 0 : i32
    %c0_i32_0 = arith.constant 0 : i32
    %c0_i32_1 = arith.constant 0 : i32
    return %c0_i32, %c0_i32_0 : i32, i32
  }
  func.func @transform_9(%arg0: i32, %arg1: i32) -> (i32, i32, i32) {
    %c0_i32 = arith.constant 0 : i32
    %c0_i32_0 = arith.constant 0 : i32
    %c0_i32_1 = arith.constant 0 : i32
    %c0_i32_2 = arith.constant 0 : i32
    return %c0_i32, %c0_i32_0, %c0_i32_1 : i32, i32, i32
  }
  func.func @transform_10(%arg0: i32, %arg1: i32) -> (i32, i32, i32) {
    %c0_i32 = arith.constant 0 : i32
    %c0_i32_0 = arith.constant 0 : i32
    %c0_i32_1 = arith.constant 0 : i32
    %c0_i32_2 = arith.constant 0 : i32
    return %c0_i32, %c0_i32_0, %c0_i32_1 : i32, i32, i32
  }
  func.func @transform_11(%arg0: i32, %arg1: i32) -> (i32, i32, i32) {
    %c0_i32 = arith.constant 0 : i32
    %c0_i32_0 = arith.constant 0 : i32
    %c0_i32_1 = arith.constant 0 : i32
    %c0_i32_2 = arith.constant 0 : i32
    return %c0_i32, %c0_i32_0, %c0_i32_1 : i32, i32, i32
  }
  func.func @transform_12(%arg0: i32, %arg1: i32) -> (i32, i32, i32) {
    %c0_i32 = arith.constant 0 : i32
    %c0_i32_0 = arith.constant 0 : i32
    %c0_i32_1 = arith.constant 0 : i32
    %c0_i32_2 = arith.constant 0 : i32
    return %c0_i32, %c0_i32_0, %c0_i32_1 : i32, i32, i32
  }
  func.func @transform_13(%arg0: i32, %arg1: i32) -> (i32, i32) {
    %c0_i32 = arith.constant 0 : i32
    %c0_i32_0 = arith.constant 0 : i32
    %c0_i32_1 = arith.constant 0 : i32
    return %c0_i32, %c0_i32_0 : i32, i32
  }
  func.func @transform_14(%arg0: i32, %arg1: i32) -> (i32, i32) {
    %c0_i32 = arith.constant 0 : i32
    %c0_i32_0 = arith.constant 0 : i32
    %c0_i32_1 = arith.constant 0 : i32
    return %c0_i32, %c0_i32_0 : i32, i32
  }
  func.func @transform_15(%arg0: i32, %arg1: i32) -> (i32, i32, i32) {
    %c0_i32 = arith.constant 0 : i32
    %c0_i32_0 = arith.constant 0 : i32
    return %arg0, %arg1, %c0_i32 : i32, i32, i32
  }
}

</mosaic_0001>

<bundles_post_ra>
// kernel: tpu_custom_call.1
= control target key start
LH: loop header
LB: loop body
LE: loop exit
PB: predicated region body
PF: predicated region fallthrough
CT: control target
= control target key end

     0   :  { %s5213_s0 = inlined_call_operand.vmem [shape: f32[2,40,3], index: 0, kind: input, shape index: {}]   ;;  %s5214_s1 = inlined_call_operand.vmem [shape: f32[2,1,128], index: 1, kind: input, shape index: {}]   ;;  %s5215_s2 = inlined_call_operand.hbm [shape: f32[2,1,128], index: 2, kind: input, shape index: {}]   ;;  %s5216_s3 = inlined_call_operand.hbm [shape: f32[3,128], index: 3, kind: input, shape index: {}]   ;;  %s5217_s4 = inlined_call_operand.hbm [shape: f32[1,128], index: 4, kind: input, shape index: {}]   ;;  %s5218_s5 = inlined_call_operand.hbm [shape: f32[128,128], index: 5, kind: input, shape index: {}]   ;;  %s5219_s6 = inlined_call_operand.hbm [shape: f32[1,128], index: 6, kind: input, shape index: {}]   ;;  %s5220_s7 = inlined_call_operand.hbm [shape: f32[128,128], index: 7, kind: input, shape index: {}]   ;;  %s5221_s8 = inlined_call_operand.hbm [shape: f32[1,128], index: 8, kind: input, shape index: {}]   ;;  %s5222_s9 = inlined_call_operand.hbm [shape: f32[5,128,128], index: 9, kind: input, shape index: {}]   ;;  %s5223_s10 = inlined_call_operand.vmem [shape: f32[5,1,128], index: 10, kind: input, shape index: {}]   ;;  %s5224_s11 = inlined_call_operand.hbm [shape: f32[5,128,128], index: 11, kind: input, shape index: {}]   ;;  %s5225_s12 = inlined_call_operand.hbm [shape: f32[5,1,128], index: 12, kind: input, shape index: {}]   ;;  %s5226_s13 = inlined_call_operand.vmem [shape: f32[128,128], index: 13, kind: input, shape index: {}]   ;;  %s5227_s14 = inlined_call_operand.vmem [shape: f32[1,128], index: 14, kind: input, shape index: {}]   ;;  %s5228_s15 = inlined_call_operand.vmem [shape: f32[2,40,1], index: 15, kind: output, shape index: {}]  }
   0x1   :  { %5236 = sst [smem:[#allocation26_spill]] %s5213_s0 }
   0x2   :  { %5237 = sst [smem:[#allocation27_spill]] %s5214_s1 }
   0x3   :  { %5238 = sst [smem:[#allocation28_spill]] %s5216_s3 }
   0x4   :  { %5239 = sst [smem:[#allocation29_spill]] %s5218_s5 }
   0x5   :  { %5240 = sst [smem:[#allocation30_spill]] %s5223_s10 }
   0x6   :  { %5241 = sst [smem:[#allocation31_spill]] %s5226_s13 }
   0x7   :  { %5242 = sst [smem:[#allocation32_spill]] %s5227_s14 }
   0x8   :  { %5243 = sst [smem:[#allocation33_spill]] %s5228_s15 }
   0x9   :  { %20 = vsyncpa [#allocation3], 0 }
   0xa   :  { %22 = vsyncpa [#allocation3 + $0x1], 0 }
   0xb   :  { %23 = vsyncpa [#allocation5], 0 }
   0xc   :  { %24 = vsyncpa [#allocation8], 0 }
   0xd   :  { %25 = vsyncpa [#allocation11], 0 }
   0xe   :  { %26 = vsyncpa [#allocation14], 0 }
   0xf   :  { %27 = vsyncpa [#allocation17], 0  ;;  %s4429_s18 = smov 0   ;;  %s4431_s19 = smov 0  }
  0x10   :  { %s4433_s20 = smov 0   ;;  %s4435_s21 = smov 0  }
  0x11   :  { %s4437_s22 = smov 0   ;;  %s4439_s23 = smov 0  }
  0x12 LB: > { %5244 = sst [smem:[#allocation24_spill]] %s4319_s21  ;;  %s2579_s24 = sadd.s32 4294967295, %s4327_s23   ;;  %s4327_s23 = sphi %s4439_s23, %s33_s23   ;;  %s4323_s22 = sphi %s4437_s22, %s5270_s22   ;;  %s4319_s21 = sphi %s4435_s21, %s5269_s21   ;;  %s4315_s20 = sphi %s4433_s20, %s5268_s20   ;;  %s4311_s19 = sphi %s4431_s19, %s5267_s19   ;;  %s4307_s18 = sphi %s4429_s18, %s5266_s18  }
  0x13   : > { %p2581_p0 = scmp.ge.s32.totalorder %s4327_s23, 1  ;;  %p4461_p1 = scmp.eq.s32.totalorder %s2579_s24, 0 }
  0x14   : > { %p410_p2 = scmp.lt.s32.totalorder %s4327_s23, 3  ;;  %s4329_s27 = smov [#allocation4]  }
  0x15   : > { %s5245_s25 = scalar_select %p4461_p1, 1, 0 }
  0x16   : > { %p4466_p3 = pnand %p2581_p0, %p410_p2  ;;  %s423_s28 = sshll.u32 %s4329_s27, 4  ;;  %s424_s28 = int_to_ptr.vmem [resolvable:$true] %s423_s28 }
  0x17   : > { %s4330_s29 = smov [#allocation7]   ;;  %s4331_s17 = smov [#allocation10]  }
  0x18   : > { %s5246_s26 = scalar_select %p4466_p3, 1, 0 }
  0x19   : > { %p3844_p4 = pneg %p4466_p3  ;;  %s444_s30 = sshll.u32 %s4330_s29, 4  ;;  %s4478_s30 = int_to_ptr.vmem [resolvable:$true] %s444_s30 }
  0x1a   : > { %5247 = sst [smem:[#allocation25_spill]] %s5246_s26  ;;  %s4480_s24 = sshll.u32 %s4331_s17, 4  ;;  %s469_s24 = int_to_ptr.vmem [resolvable:$true] %s4480_s24 }
  0x1b   : > { %p4474_p5 = pnand %p3844_p4, %p4461_p1  ;;  %s5249_s3 = sld [smem:[#allocation28_spill]] }
  0x1d   : > { %p4490_p7 = pneg %p4474_p5 }
  0x21   : > { %s3975_s27 = scalar_lea.hbm %s5249_s3, 64 }
  0x22   : > { %p3976_p6 = scmp.ne.s32.totalorder %s5249_s3, %s3975_s27  ;;  %p3982_p10 = scmp.lt.u32.totalorder %s3975_s27, %s5249_s3 }
  0x24   : > { %p3978_p8 = pnand %p4490_p7, %p3976_p6 }
  0x26   : > { %p3979_p9 = pneg %p3978_p8 }
  0x28   : > { %p3984_p11 = pnand %p3982_p10, %p3979_p9 }
  0x2a   : > { %3987 = shalt.err (!%p3984_p11)
}
  0x2b   : > { %s3988_s14 = scalar_lea.vmem %s424_s28, 64  ;;  %p3996_p2 = scmp.lt.s32.totalorder %s424_s28, %s424_s28 }
  0x2c   : > { %p3989_p12 = scmp.ne.s32.totalorder %s424_s28, %s3988_s14  ;;  %p3997_p4 = scmp.lt.s32.totalorder %s3988_s14, %s3988_s14 }
  0x2e   : > { %p3991_p13 = pnand %p3989_p12, %p4490_p7  ;;  %p3998_p3 = por %p3997_p4, %p3996_p2 }
  0x30   : > { %p3992_p0 = pneg %p3991_p13 }
  0x32   : > { %p3999_p1 = pnand %p3998_p3, %p3992_p0 }
  0x34   : > { %4002 = shalt.err (!%p3999_p1)
}
  0x35   : > { %3847 = dma.hbm_to_vmem [thread:$0]  (!%p4474_p5), %s5249_s3, 64, %s424_s28, [#allocation5]  }
  0x36   : > { %s5251_s5 = sld [smem:[#allocation29_spill]] }
  0x3c   : > { %s4003_s27 = scalar_lea.hbm %s5251_s5, 2048 }
  0x3d   : > { %p4004_p6 = scmp.ne.s32.totalorder %s5251_s5, %s4003_s27  ;;  %p4010_p1 = scmp.lt.u32.totalorder %s4003_s27, %s5251_s5 }
  0x3f   : > { %p4006_p8 = pnand %p4004_p6, %p4490_p7 }
  0x41   : > { %p4007_p9 = pneg %p4006_p8 }
  0x43   : > { %p4012_p3 = pnand %p4010_p1, %p4007_p9 }
  0x45   : > { %4015 = shalt.err (!%p4012_p3)
}
  0x46   : > { %s4016_s28 = scalar_lea.vmem %s4478_s30, 2048  ;;  %p4024_p13 = scmp.lt.s32.totalorder %s4478_s30, %s4478_s30 }
  0x47   : > { %p4017_p10 = scmp.ne.s32.totalorder %s4478_s30, %s4016_s28  ;;  %p4025_p0 = scmp.lt.s32.totalorder %s4016_s28, %s4016_s28 }
  0x49   : > { %p4019_p11 = pnand %p4017_p10, %p4490_p7  ;;  %p4026_p2 = por %p4025_p0, %p4024_p13 }
  0x4b   : > { %p4020_p12 = pneg %p4019_p11 }
  0x4d   : > { %p4027_p4 = pnand %p4026_p2, %p4020_p12 }
  0x4f   : > { %4030 = shalt.err (!%p4027_p4)
}
  0x50   : > { %s4332_s0 = smov 128   ;;  %s4333_s21 = smov 8  }
  0x51   : > { %3853 = dma.hbm_to_vmem [thread:$0]  (!%p4474_p5), %s5251_s5, 2048, %s4478_s30, [#allocation8], %s4332_s0, %s4332_s0, %s4333_s21  }
  0x52   : > { %s4031_s27 = scalar_lea.hbm %s5220_s7, 2048 }
  0x53   : > { %p4032_p6 = scmp.ne.s32.totalorder %s5220_s7, %s4031_s27  ;;  %p4038_p1 = scmp.lt.u32.totalorder %s4031_s27, %s5220_s7 }
  0x55   : > { %p4034_p8 = pnand %p4032_p6, %p4490_p7 }
  0x57   : > { %p4035_p9 = pneg %p4034_p8 }
  0x59   : > { %p4040_p3 = pnand %p4038_p1, %p4035_p9 }
  0x5b   : > { %4043 = shalt.err (!%p4040_p3)
}
  0x5c   : > { %s4044_s10 = scalar_lea.vmem %s469_s24, 2048  ;;  %p4052_p13 = scmp.lt.s32.totalorder %s469_s24, %s469_s24 }
  0x5d   : > { %p4045_p10 = scmp.ne.s32.totalorder %s469_s24, %s4044_s10  ;;  %p4053_p0 = scmp.lt.s32.totalorder %s4044_s10, %s4044_s10 }
  0x5f   : > { %p4047_p11 = pnand %p4045_p10, %p4490_p7  ;;  %p4054_p2 = por %p4053_p0, %p4052_p13 }
  0x61   : > { %p4048_p12 = pneg %p4047_p11 }
  0x63   : > { %p4055_p4 = pnand %p4054_p2, %p4048_p12 }
  0x65   : > { %4058 = shalt.err (!%p4055_p4)
}
  0x66   : > { %3859 = dma.hbm_to_vmem [thread:$0]  (!%p4474_p5), %s5220_s7, 2048, %s469_s24, [#allocation11], %s4332_s0, %s4332_s0, %s4333_s21  }
  0x67   : > { %s4334_s13 = smov [#allocation13]   ;;  %s4335_s15 = smov [#allocation6]  }
  0x68   : > { %s492_s1 = sshll.u32 %s4334_s13, 4  ;;  %s434_s27 = sshll.u32 %s4335_s15, 4  ;;  %s493_s1 = int_to_ptr.vmem [resolvable:$true] %s492_s1  ;;  %s435_s27 = int_to_ptr.vmem [resolvable:$true] %s434_s27 }
  0x69   : > { %s4059_s28 = scalar_lea.hbm %s5222_s9, 10240 }
  0x6a   : > { %p4060_p6 = scmp.ne.s32.totalorder %s5222_s9, %s4059_s28  ;;  %p4066_p1 = scmp.lt.u32.totalorder %s4059_s28, %s5222_s9 }
  0x6c   : > { %p4062_p8 = pnand %p4060_p6, %p4490_p7 }
  0x6e   : > { %p4063_p9 = pneg %p4062_p8 }
  0x70   : > { %p4068_p3 = pnand %p4066_p1, %p4063_p9 }
  0x72   : > { %4071 = shalt.err (!%p4068_p3)
}
  0x73   : > { %s4072_s24 = scalar_lea.vmem %s493_s1, 10240  ;;  %p4080_p13 = scmp.lt.s32.totalorder %s493_s1, %s493_s1 }
  0x74   : > { %p4073_p10 = scmp.ne.s32.totalorder %s493_s1, %s4072_s24  ;;  %p4081_p0 = scmp.lt.s32.totalorder %s4072_s24, %s4072_s24 }
  0x76   : > { %p4075_p11 = pnand %p4073_p10, %p4490_p7  ;;  %p4082_p2 = por %p4081_p0, %p4080_p13 }
  0x78   : > { %p4076_p12 = pneg %p4075_p11 }
  0x7a   : > { %p4083_p4 = pnand %p4082_p2, %p4076_p12 }
  0x7c   : > { %4086 = shalt.err (!%p4083_p4)
}
  0x7d   : > { %3865 = dma.hbm_to_vmem [thread:$0]  (!%p4474_p5), %s5222_s9, 10240, %s493_s1, [#allocation14], %s4332_s0, %s4332_s0, %s4333_s21  }
  0x7e   : > { %s4087_s15 = scalar_lea.hbm %s5217_s4, 16 }
  0x7f   : > { %p4088_p6 = scmp.ne.s32.totalorder %s5217_s4, %s4087_s15  ;;  %p4094_p1 = scmp.lt.u32.totalorder %s4087_s15, %s5217_s4 }
  0x81   : > { %p4090_p8 = pnand %p4088_p6, %p4490_p7 }
  0x83   : > { %p4091_p9 = pneg %p4090_p8 }
  0x85   : > { %p4096_p3 = pnand %p4094_p1, %p4091_p9 }
  0x87   : > { %4099 = shalt.err (!%p4096_p3)
}
  0x88   : > { %s4100_s3 = scalar_lea.vmem %s435_s27, 16  ;;  %s4107_s1 = scalar_lea.vmem %s435_s27, 32 }
  0x89   : > { %p4101_p10 = scmp.ne.s32.totalorder %s435_s27, %s4100_s3  ;;  %p4108_p13 = scmp.lt.s32.totalorder %s435_s27, %s435_s27 }
  0x8a   : > { %p4109_p0 = scmp.lt.s32.totalorder %s4107_s1, %s4100_s3 }
  0x8b   : > { %p4103_p11 = pnand %p4101_p10, %p4490_p7 }
  0x8c   : > { %p4110_p2 = por %p4109_p0, %p4108_p13 }
  0x8d   : > { %p4104_p12 = pneg %p4103_p11 }
  0x8f   : > { %p4111_p4 = pnand %p4110_p2, %p4104_p12 }
  0x91   : > { %4114 = shalt.err (!%p4111_p4)
}
  0x92   : > { %3850 = dma.hbm_to_vmem [thread:$0]  (!%p4474_p5), %s5217_s4, 16, %s435_s27, [#allocation5]  }
  0x93   : > { %s4336_s26 = smov [#allocation9]   ;;  %s4337_s13 = smov [#allocation12]  }
  0x94   : > { %s458_s30 = sshll.u32 %s4336_s26, 4  ;;  %s482_s15 = sshll.u32 %s4337_s13, 4  ;;  %s459_s30 = int_to_ptr.vmem [resolvable:$true] %s458_s30  ;;  %s483_s15 = int_to_ptr.vmem [resolvable:$true] %s482_s15 }
  0x95   : > { %s4115_s28 = scalar_lea.hbm %s5219_s6, 16 }
  0x96   : > { %p4116_p6 = scmp.ne.s32.totalorder %s5219_s6, %s4115_s28  ;;  %p4122_p1 = scmp.lt.u32.totalorder %s4115_s28, %s5219_s6 }
  0x98   : > { %p4118_p8 = pnand %p4116_p6, %p4490_p7 }
  0x9a   : > { %p4119_p9 = pneg %p4118_p8 }
  0x9c   : > { %p4124_p3 = pnand %p4122_p1, %p4119_p9 }
  0x9e   : > { %4127 = shalt.err (!%p4124_p3)
}
  0x9f   : > { %s4128_s27 = scalar_lea.vmem %s459_s30, 16  ;;  %s4135_s5 = scalar_lea.vmem %s459_s30, 32 }
  0xa0   : > { %p4129_p10 = scmp.ne.s32.totalorder %s459_s30, %s4128_s27  ;;  %p4136_p13 = scmp.lt.s32.totalorder %s459_s30, %s459_s30 }
  0xa1   : > { %p4137_p0 = scmp.lt.s32.totalorder %s4135_s5, %s4128_s27 }
  0xa2   : > { %p4131_p11 = pnand %p4129_p10, %p4490_p7 }
  0xa3   : > { %p4138_p2 = por %p4137_p0, %p4136_p13 }
  0xa4   : > { %p4132_p12 = pneg %p4131_p11 }
  0xa6   : > { %p4139_p4 = pnand %p4138_p2, %p4132_p12 }
  0xa8   : > { %4142 = shalt.err (!%p4139_p4)
}
  0xa9   : > { %3856 = dma.hbm_to_vmem [thread:$0]  (!%p4474_p5), %s5219_s6, 16, %s459_s30, [#allocation8]  }
  0xaa   : > { %s4143_s28 = scalar_lea.hbm %s5221_s8, 16 }
  0xab   : > { %p4144_p6 = scmp.ne.s32.totalorder %s5221_s8, %s4143_s28  ;;  %p4150_p1 = scmp.lt.u32.totalorder %s4143_s28, %s5221_s8 }
  0xad   : > { %p4146_p8 = pnand %p4144_p6, %p4490_p7 }
  0xaf   : > { %p4147_p9 = pneg %p4146_p8 }
  0xb1   : > { %p4152_p3 = pnand %p4150_p1, %p4147_p9 }
  0xb3   : > { %4155 = shalt.err (!%p4152_p3)
}
  0xb4   : > { %s4156_s27 = scalar_lea.vmem %s483_s15, 16  ;;  %s4163_s30 = scalar_lea.vmem %s483_s15, 32 }
  0xb5   : > { %p4157_p10 = scmp.ne.s32.totalorder %s483_s15, %s4156_s27  ;;  %p4164_p13 = scmp.lt.s32.totalorder %s483_s15, %s483_s15 }
  0xb6   : > { %p4165_p0 = scmp.lt.s32.totalorder %s4163_s30, %s4156_s27 }
  0xb7   : > { %p4159_p11 = pnand %p4157_p10, %p4490_p7 }
  0xb8   : > { %p4166_p2 = por %p4165_p0, %p4164_p13 }
  0xb9   : > { %p4160_p12 = pneg %p4159_p11 }
  0xbb   : > { %p4167_p4 = pnand %p4166_p2, %p4160_p12 }
  0xbd   : > { %4170 = shalt.err (!%p4167_p4)
}
  0xbe   : > { %3862 = dma.hbm_to_vmem [thread:$0]  (!%p4474_p5), %s5221_s8, 16, %s483_s15, [#allocation11]  }
  0xbf   : > { %s4338_s13 = smov [#allocation15]   ;;  %s4339_s14 = smov [#allocation16]  }
  0xc0   : > { %s508_s17 = sshll.u32 %s4338_s13, 4  ;;  %s521_s28 = sshll.u32 %s4339_s14, 4  ;;  %s509_s17 = int_to_ptr.vmem [resolvable:$true] %s508_s17  ;;  %s522_s28 = int_to_ptr.vmem [resolvable:$true] %s521_s28 }
  0xc1   : > { %s4171_s1 = scalar_lea.hbm %s5224_s11, 10240 }
  0xc2   : > { %p4172_p6 = scmp.ne.s32.totalorder %s5224_s11, %s4171_s1  ;;  %p4178_p1 = scmp.lt.u32.totalorder %s4171_s1, %s5224_s11 }
  0xc4   : > { %p4174_p8 = pnand %p4172_p6, %p4490_p7 }
  0xc6   : > { %p4175_p9 = pneg %p4174_p8 }
  0xc8   : > { %p4180_p3 = pnand %p4178_p1, %p4175_p9 }
  0xca   : > { %4183 = shalt.err (!%p4180_p3)
}
  0xcb   : > { %s4184_s15 = scalar_lea.vmem %s509_s17, 10240  ;;  %p4192_p13 = scmp.lt.s32.totalorder %s509_s17, %s509_s17 }
  0xcc   : > { %p4185_p10 = scmp.ne.s32.totalorder %s509_s17, %s4184_s15  ;;  %p4193_p0 = scmp.lt.s32.totalorder %s4184_s15, %s4184_s15 }
  0xce   : > { %p4187_p11 = pnand %p4185_p10, %p4490_p7  ;;  %p4194_p2 = por %p4193_p0, %p4192_p13 }
  0xd0   : > { %p4188_p12 = pneg %p4187_p11 }
  0xd2   : > { %p4195_p4 = pnand %p4194_p2, %p4188_p12 }
  0xd4   : > { %4198 = shalt.err (!%p4195_p4)
}
  0xd5   : > { %3868 = dma.hbm_to_vmem [thread:$0]  (!%p4474_p5), %s5224_s11, 10240, %s509_s17, [#allocation14], %s4332_s0, %s4332_s0, %s4333_s21  }
  0xd6   : > { %s4199_s3 = scalar_lea.hbm %s5225_s12, 80 }
  0xd7   : > { %p4200_p6 = scmp.ne.s32.totalorder %s5225_s12, %s4199_s3  ;;  %p4206_p1 = scmp.lt.u32.totalorder %s4199_s3, %s5225_s12 }
  0xd9   : > { %p4202_p8 = pnand %p4200_p6, %p4490_p7 }
  0xdb   : > { %p4203_p9 = pneg %p4202_p8 }
  0xdd   : > { %p4208_p3 = pnand %p4206_p1, %p4203_p9 }
  0xdf   : > { %4211 = shalt.err (!%p4208_p3)
}
  0xe0   : > { %s4212_s5 = scalar_lea.vmem %s522_s28, 80  ;;  %s4219_s0 = scalar_lea.vmem %s522_s28, 96 }
  0xe1   : > { %p4213_p10 = scmp.ne.s32.totalorder %s522_s28, %s4212_s5  ;;  %p4220_p13 = scmp.lt.s32.totalorder %s522_s28, %s522_s28 }
  0xe2   : > { %p4221_p0 = scmp.lt.s32.totalorder %s4219_s0, %s4212_s5 }
  0xe3   : > { %p4215_p11 = pnand %p4213_p10, %p4490_p7 }
  0xe4   : > { %p4222_p2 = por %p4221_p0, %p4220_p13 }
  0xe5   : > { %p4216_p12 = pneg %p4215_p11 }
  0xe7   : > { %p4223_p4 = pnand %p4222_p2, %p4216_p12 }
  0xe9   : > { %4226 = shalt.err (!%p4223_p4)
}
  0xea   : > { %s4340_s21 = smov 16   ;;  %s4341_s29 = smov 1  }
  0xeb   : > { %3871 = dma.hbm_to_vmem [thread:$0]  (!%p4474_p5), %s5225_s12, 80, %s522_s28, [#allocation17], %s4340_s21, %s4340_s21, %s4341_s29  }
  0xec   : > { %s45_s26 = sadd.s32 1, %s4323_s22  ;;  %s106_s13 = sadd.s32 1, %s4315_s20 }
  0xed   : > { %p47_p7 = scmp.ge.s32.totalorder %s45_s26, 2  ;;  %p113_p6 = scmp.ne.s32.totalorder %s4315_s20, %s4311_s19 }
  0xee   : > { %p114_p8 = scmp.eq.s32.totalorder %s4327_s23, 0  ;;  %p119_p1 = scmp.ne.s32.totalorder %s4311_s19, %s4307_s18 }
  0xef   : > { %s5272_s26 = smov (%p47_p7, %s45_s26), 0  ;;  %p3885_p3 = scmp.lt.s32.totalorder %s4327_s23, 2 }
  0xf0   : > { %p4675_p9 = por %p114_p8, %p113_p6  ;;  %s103_s16 = ssub.s32 %s4323_s22, %s5272_s26 }
  0xf1   : > { %p104_p10 = scmp.eq.s32.totalorder %s103_s16, 0  ;;  %p5253_p11 = scmp.ne.s32.totalorder %s5245_s25, 0 }
  0xf2   : > { %s560_s10 = sand.u32 1, %s4315_s20   ;;  %s2592_s3 = sshll.u32 %s4323_s22, 4 }
  0xf3   : > { %p4686_p12 = por %p5253_p11, %p119_p1  ;;  %s4698_s30 = scalar_lea.hbm %s5215_s2, %s2592_s3 }
  0xf4   : > { %s4693_s1 = scalar_select %p104_p10, %s4315_s20, %s106_s13  }
  0xf5   : > { %s563_s18 = scalar_lea.vmem [#allocation2], %s560_s10  ;;  %p4704_p5 = pnand %p3885_p3, %p4675_p9 }
  0xf6   : > { %s570_s5 = sshll.u32 %s563_s18, 4  ;;  %s561_s21 = scalar_lea.sflag [#allocation3], %s560_s10  ;;  %s4700_s5 = int_to_ptr.vmem [resolvable:$true] %s570_s5 }
  0xf7   : > { %s4227_s29 = scalar_lea.hbm %s4698_s30, 16  ;;  %p4229_p0 = pneg %p4704_p5 }
  0xf8   : > { %p4228_p13 = scmp.ne.s32.totalorder %s4698_s30, %s4227_s29  ;;  %s4232_s13 = scalar_lea.hbm %s5215_s2, 32 }
  0xf9   : > { %p4233_p7 = scmp.lt.u32.totalorder %s4698_s30, %s5215_s2  ;;  %p4234_p6 = scmp.lt.u32.totalorder %s4232_s13, %s4227_s29 }
  0xfa   : > { %p4230_p2 = pnand %p4229_p0, %p4228_p13  ;;  %p4236_p9 = scmp.lt.u32.totalorder %s4227_s29, %s4698_s30 }
  0xfb   : > { %p4235_p8 = por %p4234_p6, %p4233_p7 }
  0xfc   : > { %p4231_p4 = pneg %p4230_p2 }
  0xfd   : > { %p4237_p1 = por %p4236_p9, %p4235_p8 }
  0xff   : > { %p4238_p3 = pnand %p4237_p1, %p4231_p4 }
 0x101   : > { %4241 = shalt.err (!%p4238_p3)
}
 0x102   : > { %s4242_s10 = scalar_lea.vmem %s4700_s5, 16  ;;  %s4342_s3 = smov [#allocation2]  }
 0x103   : > { %p4243_p10 = scmp.ne.s32.totalorder %s4700_s5, %s4242_s10  ;;  %s4247_s24 = sshll.u32 %s4342_s3, 4  ;;  %s4248_s24 = int_to_ptr.vmem [resolvable:$false] %s4247_s24 }
 0x104   : > { %s4249_s27 = scalar_lea.vmem %s4248_s24, 32  ;;  %p4250_p2 = scmp.lt.s32.totalorder %s4700_s5, %s4248_s24 }
 0x105   : > { %p4245_p11 = pnand %p4243_p10, %p4229_p0  ;;  %p4251_p7 = scmp.lt.s32.totalorder %s4249_s27, %s4242_s10 }
 0x107   : > { %p4246_p13 = pneg %p4245_p11  ;;  %p4252_p6 = por %p4251_p7, %p4250_p2 }
 0x109   : > { %p4253_p8 = pnand %p4252_p6, %p4246_p13 }
 0x10b   : > { %4256 = shalt.err (!%p4253_p8)
}
 0x10c   : > { %3875 = dma.hbm_to_vmem [thread:$0]  (!%p4704_p5), %s4698_s30, 16, %s4700_s5, %s561_s21  }
 0x10d   : > { %s5256_s18 = sld [smem:[#allocation25_spill]] }
 0x113   : > { %p5257_p4 = scmp.ne.s32.totalorder %s5256_s18, 0 }
 0x114   : > { %s581_s29 = sand.u32 (!%p5257_p4), 1, %s4311_s19  }
 0x115   : > { %579 = sbr.rel (%p5257_p4) target bundleno = 2962 (0xb92), region = 80  ;;  %s582_s17 = scalar_lea.sflag (!%p5257_p4), [#allocation3], %s581_s29 }
 0x116   : > { %s4736_s15 = scalar_lea.vmem (!%p5257_p4), [#allocation2], %s581_s29 }
 0x11c   : > { %4282 = dma.done.wait (%p4686_p12), %s582_s17, 16  }
 0x11d   : > { %4284 = vsyncadd (%p4686_p12), %s582_s17, 4294967280  ;;  %p5258_p0 = scmp.ne.s32.totalorder %s5245_s25, 0 }
 0x11f   : > { %4286 = dma.done.wait (%p5258_p0), [#allocation5], 80  }
 0x120   : > { %4288 = vsyncadd (%p5258_p0), [#allocation5], 4294967216 }
 0x121   : > { %4290 = dma.done.wait (%p5258_p0), [#allocation8], 2064  }
 0x122   : > { %4292 = vsyncadd (%p5258_p0), [#allocation8], 4294965232 }
 0x123   : > { %4294 = dma.done.wait (%p5258_p0), [#allocation11], 2064  }
 0x124   : > { %4296 = vsyncadd (%p5258_p0), [#allocation11], 4294965232 }
 0x125   : > { %4298 = dma.done.wait (%p5258_p0), [#allocation14], 20480  }
 0x126   : > { %4300 = vsyncadd (%p5258_p0), [#allocation14], 4294946816 }
 0x127   : > { %4302 = dma.done.wait (%p5258_p0), [#allocation17], 80  }
 0x128   : > { %4304 = vsyncadd (%p5258_p0), [#allocation17], 4294967216  ;;  %s5259_s28 = sld [smem:[#allocation24_spill]]  ;;  %v4343_v0 = vmov 0.0|0.0   ;;  %vm4344_vm0 = vmmov 0   ;;  %v4345_v1 = vmov 0.0  }
 0x129   : > { %3477 = vmatprep.subr.bf16.mxu0 %v4343_v0  ;;  %3501 = vmatprep.subr.bf16.mxu1 %v4343_v0  ;;  %v4346_v2 = vmov 0   ;;  %v707_v3 = vld [vmem:[#allocation7] sm:$0xff]  ;;  %v708_v4 = vld [vmem:[#allocation7 + $0x8] sm:$0xff]  ;;  %v709_v8 = vld [vmem:[#allocation7 + $0x10] sm:$0xff]  ;;  %s5260_s0 = sld [smem:[#allocation26_spill]]  ;;  %v4347_v39 = vmov 2  }
 0x12a   : > { %2922 = vmatprep.mubr.msk.f32.mxu0 %vm4344_vm0, %v4345_v1  ;;  %2957 = vmatprep.mubr.msk.f32.mxu1 %vm4344_vm0, %v4345_v1  ;;  %v797_v5 = vld [vmem:[#allocation10] sm:$0xff]  ;;  %v3478_v6 = vpack.c.bf16 %v708_v4, %v707_v3  ;;  %v798_v7 = vld [vmem:[#allocation10 + $0x8] sm:$0xff]  ;;  %v710_v9 = vld [vmem:[#allocation7 + $0x18] sm:$0xff]  ;;  %v4348_v40 = vmov 1   ;;  %s5261_s16 = sld [smem:[#allocation27_spill]]  ;;  %s5262_s27 = sld [smem:[#allocation30_spill]] }
 0x12b   : > { %3964 = vset.pattern.permute.xlu1 %v4346_v2  ;;  %3962 = vset.pattern.permute.xlu0 %v4346_v2  ;;  %v3502_v10 = vpack.c.bf16 %v798_v7, %v797_v5  ;;  %v799_v11 = vld [vmem:[#allocation10 + $0x10] sm:$0xff]  ;;  %v800_v12 = vld [vmem:[#allocation10 + $0x18] sm:$0xff]  ;;  %v3481_v13 = vpack.c.bf16 %v710_v9, %v709_v8  ;;  %v712_v16 = vld [vmem:[#allocation7 + $0x28] sm:$0xff]  ;;  %s5263_s13 = sld [smem:[#allocation31_spill]]  ;;  %vm2371_vm1 = vcmask 7168  }
 0x12c   : > { %3479 = vmatpush3.bf16.msra.mxu0 %v3478_v6  ;;  %v3505_v14 = vpack.c.bf16 %v800_v12, %v799_v11  ;;  %v711_v15 = vld [vmem:[#allocation7 + $0x20] sm:$0xff]  ;;  %v802_v18 = vld [vmem:[#allocation10 + $0x28] sm:$0xff]  ;;  %v714_v22 = vld [vmem:[#allocation7 + $0x38] sm:$0xff] }
 0x12d   : > { %3480 = vmatprep.subr.bf16.mxu0 %v4343_v0  ;;  %3503 = vmatpush3.bf16.msra.mxu1 %v3502_v10  ;;  %v801_v17 = vld [vmem:[#allocation10 + $0x20] sm:$0xff]  ;;  %v3484_v19 = vpack.c.bf16 %v712_v16, %v711_v15  ;;  %v713_v21 = vld [vmem:[#allocation7 + $0x30] sm:$0xff]  ;;  %v804_v24 = vld [vmem:[#allocation10 + $0x38] sm:$0xff] }
 0x12e   : > { %p683_p12 = scmp.lt.s32.totalorder %s5259_s28, 1  ;;  %3504 = vmatprep.subr.bf16.mxu1 %v4343_v0  ;;  %v3508_v20 = vpack.c.bf16 %v802_v18, %v801_v17  ;;  %v803_v23 = vld [vmem:[#allocation10 + $0x30] sm:$0xff]  ;;  %v3487_v25 = vpack.c.bf16 %v714_v22, %v713_v21  ;;  %v715_v28 = vld [vmem:[#allocation7 + $0x40] sm:$0xff]  ;;  %v716_v29 = vld [vmem:[#allocation7 + $0x48] sm:$0xff] }
 0x12f   : > { %v3511_v27 = vpack.c.bf16 %v804_v24, %v803_v23  ;;  %v805_v30 = vld [vmem:[#allocation10 + $0x40] sm:$0xff]  ;;  %v806_v31 = vld [vmem:[#allocation10 + $0x48] sm:$0xff]  ;;  %v3490_v33 = vpack.c.bf16 %v716_v29, %v715_v28  ;;  %v718_v36 = vld [vmem:[#allocation7 + $0x58] sm:$0xff] }
 0x130   : > { %s5274_s28 = smov (!%p683_p12, %s5259_s28), 1  ;;  %3482 = vmatpush3.bf16.msra.mxu0 %v3481_v13  ;;  %v3514_v34 = vpack.c.bf16 %v806_v31, %v805_v30  ;;  %v717_v35 = vld [vmem:[#allocation7 + $0x50] sm:$0xff]  ;;  %v808_v38 = vld [vmem:[#allocation10 + $0x58] sm:$0xff]  ;;  %v720_v44 = vld [vmem:[#allocation7 + $0x68] sm:$0xff] }
 0x131   : > { %s3805_s25 = smul.u32 40, %s5274_s28  ;;  %3483 = vmatprep.subr.bf16.mxu0 %v4343_v0  ;;  %3506 = vmatpush3.bf16.msra.mxu1 %v3505_v14  ;;  %v807_v37 = vld [vmem:[#allocation10 + $0x50] sm:$0xff]  ;;  %v3493_v41 = vpack.c.bf16 %v718_v36, %v717_v35  ;;  %v719_v43 = vld [vmem:[#allocation7 + $0x60] sm:$0xff]  ;;  %v810_v46 = vld [vmem:[#allocation10 + $0x68] sm:$0xff]  ;;  %s694_s10 = scalar_lea.vmem %s5261_s16, %s5274_s28 }
 0x132   : > { %3507 = vmatprep.subr.bf16.mxu1 %v4343_v0  ;;  %v3517_v42 = vpack.c.bf16 %v808_v38, %v807_v37  ;;  %v809_v45 = vld [vmem:[#allocation10 + $0x60] sm:$0xff]  ;;  %v3496_v47 = vpack.c.bf16 %v720_v44, %v719_v43  ;;  %v721_v49 = vld [vmem:[#allocation7 + $0x70] sm:$0xff]  ;;  %v722_v50 = vld [vmem:[#allocation7 + $0x78] sm:$0xff] }
 0x133   : > { %s4783_s21 = scalar_lea.vmem %s5260_s0, %s3805_s25  ;;  %v3520_v48 = vpack.c.bf16 %v810_v46, %v809_v45  ;;  %v811_v51 = vld [vmem:[#allocation10 + $0x70] sm:$0xff]  ;;  %v812_v52 = vld [vmem:[#allocation10 + $0x78] sm:$0xff]  ;;  %v3499_v54 = vpack.c.bf16 %v722_v50, %v721_v49  ;;  %v1012_v57 = vld [vmem:[#allocation13] sm:$0xff]  ;;  %v892_v49 = vlaneseq  ;;  %s5265_s0 = sld [smem:[#allocation33_spill]] }
 0x134   : > { %3485 = vmatpush3.bf16.msra.mxu0 %v3484_v19  ;;  %v887_v26 = vld [vmem:[%s4783_s21 + $0x8] sm:$0xff]  ;;  %v886_v32 = vld [vmem:[%s4783_s21] sm:$0xff]  ;;  %v888_v53 = vld [vmem:[%s4783_s21 + $0x10] sm:$0xff]  ;;  %v3523_v56 = vpack.c.bf16 %v812_v52, %v811_v51 }
 0x135   : > { %3486 = vmatprep.subr.bf16.mxu0 %v4343_v0  ;;  %3509 = vmatpush3.bf16.msra.mxu1 %v3508_v20  ;;  %v889_v55 = vld [vmem:[%s4783_s21 + $0x18] sm:$0xff]  ;;  %v706_v59 = vld [vmem:[%s694_s10] sm:$0x1]  ;;  %v1015_v63 = vld [vmem:[#allocation13 + $0x18] sm:$0xff] }
 0x136   : > { %3510 = vmatprep.subr.bf16.mxu1 %v4343_v0  ;;  %905 = vperm.xlu1 %3964, %v887_v26   ;;  %v1013_v58 = vld [vmem:[#allocation13 + $0x8] sm:$0xff]  ;;  %v796_v60 = vld [vmem:[%s4736_s15] sm:$0x1]  ;;  %v1016_v4 = vld [vmem:[#allocation13 + $0x20] sm:$0xff]  ;;  %s5264_s15 = sld [smem:[#allocation32_spill]] }
 0x137   : > { %900 = vperm.xlu0 %3962, %v886_v32   ;;  %v3526_v61 = vpack.c.bf16 %v1013_v58, %v1012_v57  ;;  %v1014_v62 = vld [vmem:[#allocation13 + $0x10] sm:$0xff]  ;;  %v1017_v5 = vld [vmem:[#allocation13 + $0x28] sm:$0xff]  ;;  %v1019_v9 = vld [vmem:[#allocation13 + $0x38] sm:$0xff]  ;;  %v893_v58 = vshrl.u32 %v892_v49, 7 }
 0x138   : > { %3488 = vmatpush3.bf16.msra.mxu0 %v3487_v25  ;;  %v3529_v3 = vpack.c.bf16 %v1015_v63, %v1014_v62  ;;  %v890_v6 = vld [vmem:[%s4783_s21 + $0x20] sm:$0xff]  ;;  %v3532_v7 = vpack.c.bf16 %v1017_v5, %v1016_v4  ;;  %v1020_v11 = vld [vmem:[#allocation13 + $0x40] sm:$0xff]  ;;  %v1021_v12 = vld [vmem:[#allocation13 + $0x48] sm:$0xff] }
 0x139   : > { %3489 = vmatprep.subr.bf16.mxu0 %v4343_v0  ;;  %3512 = vmatpush3.bf16.msra.mxu1 %v3511_v27  ;;  %v1018_v8 = vld [vmem:[#allocation13 + $0x30] sm:$0xff]  ;;  %v3538_v13 = vpack.c.bf16 %v1021_v12, %v1020_v11  ;;  %v1023_v14 = vld [vmem:[#allocation13 + $0x58] sm:$0xff]  ;;  %v1024_v16 = vld [vmem:[#allocation13 + $0x60] sm:$0xff]  ;;  %v894_v4 = vsub.s32 0, %v893_v58  ;;  %s703_s21 = scalar_lea.vmem %s5265_s0, %s3805_s25 }
 0x13a   : > { %3513 = vmatprep.subr.bf16.mxu1 %v4343_v0  ;;  %3965 = vset.pattern.permute.xlu1 %v4347_v39  ;;  %v3535_v10 = vpack.c.bf16 %v1019_v9, %v1018_v8  ;;  %v1025_v17 = vld [vmem:[#allocation13 + $0x68] sm:$0xff]  ;;  %v1026_v19 = vld [vmem:[#allocation13 + $0x70] sm:$0xff]  ;;  %v1027_v20 = vld [vmem:[#allocation13 + $0x78] sm:$0xff] }
 0x13b   : > { %974 = vperm.xlu1 %3965, %v886_v32   ;;  %3963 = vset.pattern.permute.xlu0 %v4348_v40  ;;  %v3544_v18 = vpack.c.bf16 %v1025_v17, %v1024_v16  ;;  %v3547_v21 = vpack.c.bf16 %v1027_v20, %v1026_v19  ;;  %v1130_v22 = vld [vmem:[#allocation15] sm:$0xff]  ;;  %v1131_v23 = vld [vmem:[#allocation15 + $0x8] sm:$0xff]  ;;  %v1132_v24 = vld [vmem:[#allocation15 + $0x10] sm:$0xff] }
 0x13c   : > { %3491 = vmatpush3.bf16.msra.mxu0 %v3490_v33  ;;  %939 = vperm.xlu0 %3963, %v886_v32   ;;  %v3550_v25 = vpack.c.bf16 %v1131_v23, %v1130_v22  ;;  %v1134_v28 = vld [vmem:[#allocation15 + $0x20] sm:$0xff]  ;;  %v1135_v29 = vld [vmem:[#allocation15 + $0x28] sm:$0xff]  ;;  %v1136_v31 = vld [vmem:[#allocation15 + $0x30] sm:$0xff] }
 0x13d   : > { %3492 = vmatprep.subr.bf16.mxu0 %v4343_v0  ;;  %3515 = vmatpush3.bf16.msra.mxu1 %v3514_v34  ;;  %v3556_v30 = vpack.c.bf16 %v1135_v29, %v1134_v28  ;;  %v1137_v32 = vld [vmem:[#allocation15 + $0x38] sm:$0xff]  ;;  %v1138_v34 = vld [vmem:[#allocation15 + $0x40] sm:$0xff]  ;;  %v1139_v35 = vld [vmem:[#allocation15 + $0x48] sm:$0xff] }
 0x13e   : > { %3516 = vmatprep.subr.bf16.mxu1 %v4343_v0  ;;  %v3559_v33 = vpack.c.bf16 %v1137_v32, %v1136_v31  ;;  %v3562_v36 = vpack.c.bf16 %v1139_v35, %v1138_v34  ;;  %v1140_v37 = vld [vmem:[#allocation15 + $0x50] sm:$0xff]  ;;  %v1141_v38 = vld [vmem:[#allocation15 + $0x58] sm:$0xff]  ;;  %v1263_v58 = vld [vmem:[#allocation13 + $0xa0] sm:$0xff] }
 0x13f   : > { %3966 = vset.pattern.permute.xlu1 %v4348_v40  ;;  %v705_v51 = vld [vmem:[#allocation6] sm:$0x1]  ;;  %v884_v62 = vld [vmem:[#allocation12] sm:$0x1]  ;;  %v2605_v5 = vld [vmem:[#allocation4] ss:$0 sm:$0xff] }
 0x140   : > { %3494 = vmatpush3.bf16.msra.mxu0 %v3493_v41  ;;  %943 = vperm.xlu1 %3966, %v887_v26   ;;  %v1143_v41 = vld [vmem:[#allocation15 + $0x68] sm:$0xff]  ;;  %v2607_v9 = vld [vmem:[#allocation4 + $0x2] ss:$0 sm:$0xff]  ;;  %v1144_v49 = vld [vmem:[#allocation15 + $0x70] sm:$0xff] }
 0x141   : > { %3495 = vmatprep.subr.bf16.mxu0 %v4343_v0  ;;  %3518 = vmatpush3.bf16.msra.mxu1 %v3517_v42 }
 0x142   : > { %3519 = vmatprep.subr.bf16.mxu1 %v4343_v0  ;;  %3967 = vset.pattern.permute.xlu0 %v4346_v2 }
 0x143   : > { %910 = vperm.xlu0 %3967, %v888_v53  }
 0x144   : > { %3497 = vmatpush3.bf16.msra.mxu0 %v3496_v47  ;;  %3968 = vset.pattern.permute.xlu1 %v4347_v39 }
 0x145   : > { %3498 = vmatprep.subr.bf16.mxu0 %v4343_v0  ;;  %3521 = vmatpush3.bf16.msra.mxu1 %v3520_v48 }
 0x146   : > { %3522 = vmatprep.subr.bf16.mxu1 %v4343_v0  ;;  %978 = vperm.xlu1 %3968, %v887_v26   ;;  %v1133_v26 = vld [vmem:[#allocation15 + $0x18] sm:$0xff] }
 0x147   : > { %915 = vperm.xlu0 %3967, %v889_v55   ;;  %v3553_v27 = vpack.c.bf16 %v1133_v26, %v1132_v24 }
 0x148   : > { %3500 = vmatpush3.bf16.msra.mxu0 %v3499_v54  ;;  %v794_v54 = vld [vmem:[#allocation9] sm:$0x1] }
 0x149   : > { %3524 = vmatpush3.bf16.msra.mxu1 %v3523_v56  ;;  %3525 = vmatprep.subr.bf16.mxu0 %v4343_v0 }
 0x14a   : > { %3969 = vset.pattern.permute.xlu1 %v4348_v40  ;;  %3549 = vmatprep.subr.bf16.mxu1 %v4343_v0 }
 0x14b   : > { %2923 = vmatmul.mubr.f32.vlgmr.msra.gmra.mrb[0].mxu0 %v706_v59  ;;  %947 = vperm.xlu1 %3969, %v888_v53  }
 0x14c   : > { %2958 = vmatmul.mubr.f32.vlgmr.msra.gmra.mrb[0].mxu1 %v796_v60  ;;  %3971 = vset.pattern.permute.xlu0 %v4348_v40  ;;  %v1142_v40 = vld [vmem:[#allocation15 + $0x60] sm:$0xff] }
 0x14d   : > { %951 = vperm.xlu0 %3971, %v889_v55   ;;  %3527 = vmatpush3.bf16.msra.mxu0 %v3526_v61  ;;  %v3568_v42 = vpack.c.bf16 %v1143_v41, %v1142_v40 }
 0x14e   : > { %3528 = vmatprep.subr.bf16.mxu0 %v4343_v0  ;;  %2992 = vmatprep.mubr.msk.f32.mxu0 %vm4344_vm0, %v4345_v1 }
 0x14f   : > { %3970 = vset.pattern.permute.xlu1 %v4347_v39  ;;  %3039 = vmatprep.mubr.msk.f32.mxu1 %vm4344_vm0, %v4345_v1 }
 0x150   : > { %982 = vperm.xlu1 %3970, %v888_v53   ;;  %3551 = vmatpush3.bf16.msra.mxu1 %v3550_v25 }
 0x151   : > { %955 = vperm.xlu0 %3971, %v890_v6   ;;  %3530 = vmatpush3.bf16.msra.mxu0 %v3529_v3 }
 0x152   : > { %3531 = vmatprep.subr.bf16.mxu0 %v4343_v0  ;;  %3552 = vmatprep.subr.bf16.mxu1 %v4343_v0 }
 0x154   : > { %3972 = vset.pattern.permute.xlu1 %v4346_v2  ;;  %v1022_v2 = vld [vmem:[#allocation13 + $0x50] sm:$0xff]  ;;  %3554 = vmatpush3.bf16.msra.mxu1 %v3553_v27 }
 0x155   : > { %920 = vperm.xlu1 %3972, %v890_v6   ;;  %3533 = vmatpush3.bf16.msra.mxu0 %v3532_v7  ;;  %v3541_v15 = vpack.c.bf16 %v1023_v14, %v1022_v2  ;;  %v2606_v7 = vld [vmem:[#allocation4 + $0x1] ss:$0 sm:$0xff] }
 0x156   : > { %3534 = vmatprep.subr.bf16.mxu0 %v4343_v0  ;;  %3974 = vset.pattern.permute.xlu0 %v4347_v39 }
 0x157   : > { %3555 = vmatprep.subr.bf16.mxu1 %v4343_v0 }
 0x158   : > { %3557 = vmatpush3.bf16.msra.mxu1 %v3556_v30 }
 0x159   : > { %3973 = vset.pattern.permute.xlu1 %v4347_v39  ;;  %3536 = vmatpush3.bf16.msra.mxu0 %v3535_v10  ;;  %v3565_v39 = vpack.c.bf16 %v1141_v38, %v1140_v37 }
 0x15a   : > { %986 = vperm.xlu1 %3973, %v889_v55   ;;  %3537 = vmatprep.subr.bf16.mxu0 %v4343_v0 }
 0x15b   : > { %3558 = vmatprep.subr.bf16.mxu1 %v4343_v0 }
 0x15c   : > { %3560 = vmatpush3.bf16.msra.mxu1 %v3559_v33 }
 0x15d   : > { %3539 = vmatpush3.bf16.msra.mxu0 %v3538_v13  ;;  %3561 = vmatprep.subr.bf16.mxu1 %v4343_v0 }
 0x15e   : > { %990 = vperm.xlu1 %3973, %v890_v6   ;;  %3540 = vmatprep.subr.bf16.mxu0 %v4343_v0 }
 0x160   : > { %3563 = vmatpush3.bf16.msra.mxu1 %v3562_v36 }
 0x161   : > { %3542 = vmatpush3.bf16.msra.mxu0 %v3541_v15  ;;  %3564 = vmatprep.subr.bf16.mxu1 %v4343_v0 }
 0x162   : > { %3543 = vmatprep.subr.bf16.mxu0 %v4343_v0 }
 0x164   : > { %3566 = vmatpush3.bf16.msra.mxu1 %v3565_v39 }
 0x165   : > { %3545 = vmatpush3.bf16.msra.mxu0 %v3544_v18  ;;  %3567 = vmatprep.subr.bf16.mxu1 %v4343_v0 }
 0x166   : > { %3546 = vmatprep.subr.bf16.mxu0 %v4343_v0 }
 0x168   : > { %3569 = vmatpush3.bf16.msra.mxu1 %v3568_v42 }
 0x169   : > { %3548 = vmatpush3.bf16.msra.mxu0 %v3547_v21  ;;  %3570 = vmatprep.subr.bf16.mxu1 %v4343_v0 }
 0x16a   : > { %3573 = vmatprep.subr.bf16.mxu0 %v4343_v0 }
 0x1b5   : > { %v906_v43 = vpop.permute.xlu1 %905 }
 0x1b6   : > { %v901_v46 = vpop.permute.xlu0 %900  ;;  %v928_v8 = vmul.f32 %v2605_v5, %v906_v43 }
 0x1b7   : > { %v927_v10 = vmul.f32 %v2605_v5, %v901_v46 }
 0x1ba   : > { %v975_v44 = vpop.permute.xlu1 %974 }
 0x1bb   : > { %v940_v48 = vpop.permute.xlu0 %939  ;;  %v997_v18 = vmul.f32 %v2607_v9, %v975_v44 }
 0x1bc   : > { %v962_v14 = vmul.f32 %v2606_v7, %v940_v48 }
 0x1bf   : > { %v944_v45 = vpop.permute.xlu1 %943 }
 0x1c0   : > { %v963_v2 = vmul.f32 %v2606_v7, %v944_v45 }
 0x1c2   : > { %v911_v52 = vpop.permute.xlu0 %910 }
 0x1c3   : > { %v929_v11 = vmul.f32 %v2605_v5, %v911_v52  ;;  %v1259_v52 = vld [vmem:[#allocation13 + $0x80] sm:$0xff] }
 0x1c5   : > { %v979_v47 = vpop.permute.xlu1 %978 }
 0x1c6   : > { %v916_v63 = vpop.permute.xlu0 %915  ;;  %v998_v24 = vmul.f32 %v2607_v9, %v979_v47 }
 0x1c7   : > { %v930_v19 = vmul.f32 %v2605_v5, %v916_v63 }
 0x1ca   : > { %v948_v50 = vpop.permute.xlu1 %947 }
 0x1cb   : > { %v964_v20 = vmul.f32 %v2606_v7, %v948_v50  ;;  %v1145_v50 = vld [vmem:[#allocation15 + $0x78] sm:$0xff] }
 0x1cc   : > { %v952_v15 = vpop.permute.xlu0 %951 }
 0x1cd   : > { %v965_v28 = vmul.f32 %v2606_v7, %v952_v15 }
 0x1cf   : > { %v983_v61 = vpop.permute.xlu1 %982 }
 0x1d0   : > { %v999_v26 = vmul.f32 %v2607_v9, %v983_v61  ;;  %v956_v31 = vpop.permute.xlu0 %955  ;;  %v1265_v61 = vld [vmem:[#allocation13 + $0xb0] sm:$0xff] }
 0x1d1   : > { %v966_v36 = vmul.f32 %v2606_v7, %v956_v31  ;;  %v1270_v7 = vld [vmem:[#allocation13 + $0xd8] sm:$0xff]  ;;  %v1272_v31 = vld [vmem:[#allocation13 + $0xe8] sm:$0xff] }
 0x1d4   : > { %v921_v13 = vpop.permute.xlu1 %920 }
 0x1d5   : > { %v931_v27 = vmul.f32 %v2605_v5, %v921_v13 }
 0x1d9   : > { %v987_v29 = vpop.permute.xlu1 %986 }
 0x1da   : > { %v1000_v35 = vmul.f32 %v2607_v9, %v987_v29 }
 0x1dd   : > { %v991_v41 = vpop.permute.xlu1 %990 }
 0x1de   : > { %v1001_v44 = vmul.f32 %v2607_v9, %v991_v41  ;;  %v2608_v9 = vld [vmem:[%s5262_s27] ss:$0 sm:$0xff] }
 0x21e   : > { %v789_v53 = vpop.f32.mrb[0].mxu0 }
 0x21f   : > { %v793_v55 = vadd.f32 %v789_v53, %v705_v51  ;;  %v2924_v56 = vpop.f32.mrb[1].mxu0  ;;  %v879_v57 = vpop.f32.mrb[0].mxu1  ;;  %v3571_v51 = vpack.c.bf16 %v1145_v50, %v1144_v49  ;;  %v1260_v53 = vld [vmem:[#allocation13 + $0x88] sm:$0xff]  ;;  %v1385_v49 = vld [vmem:[#allocation15 + $0xb0] sm:$0xff]  ;;  %v1386_v50 = vld [vmem:[#allocation15 + $0xb8] sm:$0xff] }
 0x220   : > { %v2959_v59 = vpop.f32.mrb[1].mxu1  ;;  %v1262_v56 = vld [vmem:[#allocation13 + $0x98] sm:$0xff] }
 0x221   : > { %v795_v60 = vadd.f32 %v794_v54, %v793_v55  ;;  %3572 = vmatpush3.bf16.msra.mxu1 %v3571_v51  ;;  %v1261_v54 = vld [vmem:[#allocation13 + $0x90] sm:$0xff]  ;;  %v3574_v55 = vpack.c.bf16 %v1260_v53, %v1259_v52  ;;  %v1264_v59 = vld [vmem:[#allocation13 + $0xa8] sm:$0xff]  ;;  %v3607_v51 = vpack.c.bf16 %v1386_v50, %v1385_v49  ;;  %v1387_v52 = vld [vmem:[#allocation15 + $0xc0] sm:$0xff] }
 0x222   : > { %3597 = vmatprep.subr.bf16.mxu1 %v4343_v0  ;;  %v1388_v53 = vld [vmem:[#allocation15 + $0xc8] sm:$0xff] }
 0x223   : > { %v883_v3 = vadd.f32 %v879_v57, %v795_v60  ;;  %v3577_v57 = vpack.c.bf16 %v1262_v56, %v1261_v54  ;;  %v3580_v60 = vpack.c.bf16 %v1264_v59, %v1263_v58  ;;  %v3610_v54 = vpack.c.bf16 %v1388_v53, %v1387_v52  ;;  %v1390_v56 = vld [vmem:[#allocation15 + $0xd8] sm:$0xff]  ;;  %v1391_v58 = vld [vmem:[#allocation15 + $0xe0] sm:$0xff]  ;;  %v1392_v59 = vld [vmem:[#allocation15 + $0xe8] sm:$0xff] }
 0x225   : > { %v885_v6 = vadd.f32 %v884_v62, %v883_v3  ;;  %v1266_v62 = vld [vmem:[#allocation13 + $0xb8] sm:$0xff]  ;;  %v1267_v3 = vld [vmem:[#allocation13 + $0xc0] sm:$0xff] }
 0x226   : > { %v3583_v63 = vpack.c.bf16 %v1266_v62, %v1265_v61  ;;  %v2609_v62 = vld [vmem:[#allocation16] ss:$0 sm:$0xff] }
 0x227   : > { %v895_v12 = vrot.slane %v885_v6, %v894_v4  ;;  %v1268_v4 = vld [vmem:[#allocation13 + $0xc8] sm:$0xff]  ;;  %v1269_v6 = vld [vmem:[#allocation13 + $0xd0] sm:$0xff] }
 0x228   : > { %v3586_v5 = vpack.c.bf16 %v1268_v4, %v1267_v3 }
 0x229   : > { %v932_v16 = vadd.f32 %v927_v10, %v895_v12  ;;  %v933_v17 = vadd.f32 %v928_v8, %v895_v12  ;;  %v934_v23 = vadd.f32 %v929_v11, %v895_v12  ;;  %v935_v30 = vadd.f32 %v930_v19, %v895_v12 }
 0x22a   : > { %v936_v37 = vadd.f32 %v931_v27, %v895_v12  ;;  %v3589_v8 = vpack.c.bf16 %v1270_v7, %v1269_v6 }
 0x22b   : > { %v967_v21 = vadd.f32 %v962_v14, %v932_v16  ;;  %v968_v22 = vadd.f32 %v963_v2, %v933_v17  ;;  %v969_v34 = vadd.f32 %v964_v20, %v934_v23  ;;  %v970_v38 = vadd.f32 %v965_v28, %v935_v30  ;;  %v1271_v30 = vld [vmem:[#allocation13 + $0xe0] sm:$0xff] }
 0x22c   : > { %v971_v43 = vadd.f32 %v966_v36, %v936_v37  ;;  %v1379_v37 = vld [vmem:[#allocation15 + $0x80] sm:$0xff] }
 0x22d   : > { %v4834_v25 = vadd.f32 %v997_v18, %v967_v21  ;;  %v4837_v33 = vadd.f32 %v998_v24, %v968_v22  ;;  %v4842_v40 = vadd.f32 %v999_v26, %v969_v34  ;;  %v4846_v42 = vadd.f32 %v1000_v35, %v970_v38  ;;  %v1273_v34 = vld [vmem:[#allocation13 + $0xf0] sm:$0xff]  ;;  %v1274_v35 = vld [vmem:[#allocation13 + $0xf8] sm:$0xff]  ;;  %v1380_v38 = vld [vmem:[#allocation15 + $0x88] sm:$0xff] }
 0x22e   : > { %v4851_v46 = vadd.f32 %v1001_v44, %v971_v43  ;;  %v3595_v36 = vpack.c.bf16 %v1274_v35, %v1273_v34  ;;  %v3598_v41 = vpack.c.bf16 %v1380_v38, %v1379_v37  ;;  %v1382_v43 = vld [vmem:[#allocation15 + $0x98] sm:$0xff]  ;;  %v1515_v34 = vld [vmem:[#allocation13 + $0x130] sm:$0xff]  ;;  %v1517_v37 = vld [vmem:[#allocation13 + $0x140] sm:$0xff] }
 0x22f   : > { %v1007_v32 = vmax.f32 %v4834_v25, 0.0  ;;  %v1008_v39 = vmax.f32 %v4837_v33, 0.0  ;;  %v1009_v45 = vmax.f32 %v4842_v40, 0.0  ;;  %v1010_v47 = vmax.f32 %v4846_v42, 0.0  ;;  %v1516_v35 = vld [vmem:[#allocation13 + $0x138] sm:$0xff]  ;;  %v1518_v38 = vld [vmem:[#allocation13 + $0x148] sm:$0xff] }
 0x230   : > { %v1011_v48 = vmax.f32 %v4851_v46, 0.0 }
 0x231   : > { %2993 = vmatmul.mubr.f32.vlgmr.msra.gmra.mrb[2].mxu0 %v1007_v32  ;;  %v3592_v32 = vpack.c.bf16 %v1272_v31, %v1271_v30  ;;  %v1513_v30 = vld [vmem:[#allocation13 + $0x120] sm:$0xff]  ;;  %v1514_v31 = vld [vmem:[#allocation13 + $0x128] sm:$0xff] }
 0x232   : > { %2995 = vmatprep.mubr.msk.f32.mxu0 %vm4344_vm0, %v4345_v1  ;;  %3575 = vmatpush3.bf16.msra.mxu0 %v3574_v55  ;;  %v1389_v55 = vld [vmem:[#allocation15 + $0xd0] sm:$0xff] }
 0x233   : > { %3576 = vmatprep.subr.bf16.mxu0 %v4343_v0 }
 0x235   : > { %2996 = vmatmul.mubr.f32.gmra.mrb[4].mxu0 %v1008_v39  ;;  %v1381_v39 = vld [vmem:[#allocation15 + $0x90] sm:$0xff] }
 0x236   : > { %2998 = vmatprep.mubr.msk.f32.mxu0 %vm4344_vm0, %v4345_v1  ;;  %3578 = vmatpush3.bf16.msra.mxu0 %v3577_v57  ;;  %v3601_v44 = vpack.c.bf16 %v1382_v43, %v1381_v39  ;;  %v3613_v57 = vpack.c.bf16 %v1390_v56, %v1389_v55  ;;  %v3634_v39 = vpack.c.bf16 %v1518_v38, %v1517_v37  ;;  %v1520_v43 = vld [vmem:[#allocation13 + $0x158] sm:$0xff] }
 0x237   : > { %3579 = vmatprep.subr.bf16.mxu0 %v4343_v0 }
 0x239   : > { %2999 = vmatmul.mubr.f32.gmra.mrb[6].mxu0 %v1009_v45  ;;  %v1383_v45 = vld [vmem:[#allocation15 + $0xa0] sm:$0xff] }
 0x23a   : > { %3001 = vmatprep.mubr.msk.f32.mxu0 %vm4344_vm0, %v4345_v1  ;;  %3581 = vmatpush3.bf16.msra.mxu0 %v3580_v60  ;;  %v3616_v60 = vpack.c.bf16 %v1392_v59, %v1391_v58 }
 0x23b   : > { %3582 = vmatprep.subr.bf16.mxu0 %v4343_v0 }
 0x23d   : > { %3002 = vmatmul.mubr.f32.gmra.mrb[8].mxu0 %v1010_v47  ;;  %v1384_v47 = vld [vmem:[#allocation15 + $0xa8] sm:$0xff] }
 0x23e   : > { %3004 = vmatprep.mubr.msk.f32.mxu0 %vm4344_vm0, %v4345_v1  ;;  %3584 = vmatpush3.bf16.msra.mxu0 %v3583_v63 }
 0x23f   : > { %3585 = vmatprep.subr.bf16.mxu0 %v4343_v0 }
 0x241   : > { %3005 = vmatmul.mubr.f32.gmra.mrb[10].mxu0 %v1011_v48  ;;  %v3604_v48 = vpack.c.bf16 %v1384_v47, %v1383_v45  ;;  %v2611_v45 = vld [vmem:[%s5262_s27 + $0x1] ss:$0 sm:$0xff] }
 0x242   : > { %3086 = vmatprep.mubr.msk.f32.mxu0 %vm4344_vm0, %v4345_v1  ;;  %3587 = vmatpush3.bf16.msra.mxu0 %v3586_v5 }
 0x243   : > { %3588 = vmatprep.subr.bf16.mxu0 %v4343_v0 }
 0x246   : > { %3590 = vmatpush3.bf16.msra.mxu0 %v3589_v8 }
 0x247   : > { %3591 = vmatprep.subr.bf16.mxu0 %v4343_v0 }
 0x24a   : > { %3593 = vmatpush3.bf16.msra.mxu0 %v3592_v32  ;;  %v3628_v32 = vpack.c.bf16 %v1514_v31, %v1513_v30  ;;  %v1641_v30 = vld [vmem:[#allocation15 + $0x160] sm:$0xff]  ;;  %v1642_v31 = vld [vmem:[#allocation15 + $0x168] sm:$0xff] }
 0x24b   : > { %3594 = vmatprep.subr.bf16.mxu0 %v4343_v0 }
 0x24e   : > { %3596 = vmatpush3.bf16.msra.mxu0 %v3595_v36  ;;  %v3631_v36 = vpack.c.bf16 %v1516_v35, %v1515_v34  ;;  %v2612_v35 = vld [vmem:[#allocation16 + $0x1] ss:$0 sm:$0xff] }
 0x24f   : > { %3621 = vmatprep.subr.bf16.mxu0 %v4343_v0 }
 0x304   : > { %v1101_v10 = vpop.f32.mrb[2].mxu0 }
 0x305   : > { %v1102_v11 = vadd.f32 %v2608_v9, %v1101_v10  ;;  %v2994_v12 = vpop.f32.mrb[3].mxu0 }
 0x307   : > { %v1125_v13 = vmax.f32 %v1102_v11, 0.0 }
 0x308   : > { %v1106_v2 = vpop.f32.mrb[4].mxu0 }
 0x309   : > { %v1107_v14 = vadd.f32 %v2608_v9, %v1106_v2  ;;  %v2997_v15 = vpop.f32.mrb[5].mxu0  ;;  %3040 = vmatmul.mubr.f32.vlgmr.msra.gmra.mrb[2].mxu1 %v1125_v13 }
 0x30a   : > { %3042 = vmatprep.mubr.msk.f32.mxu1 %vm4344_vm0, %v4345_v1  ;;  %3599 = vmatpush3.bf16.msra.mxu1 %v3598_v41  ;;  %v1519_v41 = vld [vmem:[#allocation13 + $0x150] sm:$0xff] }
 0x30b   : > { %v1126_v16 = vmax.f32 %v1107_v14, 0.0  ;;  %3600 = vmatprep.subr.bf16.mxu1 %v4343_v0 }
 0x30c   : > { %v1111_v17 = vpop.f32.mrb[6].mxu0 }
 0x30d   : > { %v1112_v18 = vadd.f32 %v2608_v9, %v1111_v17  ;;  %v3000_v19 = vpop.f32.mrb[7].mxu0  ;;  %3043 = vmatmul.mubr.f32.gmra.mrb[4].mxu1 %v1126_v16 }
 0x30e   : > { %3045 = vmatprep.mubr.msk.f32.mxu1 %vm4344_vm0, %v4345_v1  ;;  %3602 = vmatpush3.bf16.msra.mxu1 %v3601_v44  ;;  %v3637_v44 = vpack.c.bf16 %v1520_v43, %v1519_v41 }
 0x30f   : > { %v1127_v20 = vmax.f32 %v1112_v18, 0.0  ;;  %3603 = vmatprep.subr.bf16.mxu1 %v4343_v0 }
 0x310   : > { %v1116_v21 = vpop.f32.mrb[8].mxu0 }
 0x311   : > { %v1117_v22 = vadd.f32 %v2608_v9, %v1116_v21  ;;  %v3003_v23 = vpop.f32.mrb[9].mxu0  ;;  %3046 = vmatmul.mubr.f32.gmra.mrb[6].mxu1 %v1127_v20  ;;  %v1393_v21 = vld [vmem:[#allocation15 + $0xf0] sm:$0xff] }
 0x312   : > { %3048 = vmatprep.mubr.msk.f32.mxu1 %vm4344_vm0, %v4345_v1  ;;  %3605 = vmatpush3.bf16.msra.mxu1 %v3604_v48 }
 0x313   : > { %v1128_v24 = vmax.f32 %v1117_v22, 0.0  ;;  %3606 = vmatprep.subr.bf16.mxu1 %v4343_v0  ;;  %v1394_v22 = vld [vmem:[#allocation15 + $0xf8] sm:$0xff] }
 0x314   : > { %v1121_v26 = vpop.f32.mrb[10].mxu0  ;;  %v3619_v23 = vpack.c.bf16 %v1394_v22, %v1393_v21  ;;  %v1635_v21 = vld [vmem:[#allocation15 + $0x130] sm:$0xff]  ;;  %v1636_v22 = vld [vmem:[#allocation15 + $0x138] sm:$0xff] }
 0x315   : > { %v1122_v27 = vadd.f32 %v2608_v9, %v1121_v26  ;;  %v3006_v28 = vpop.f32.mrb[11].mxu0  ;;  %3049 = vmatmul.mubr.f32.gmra.mrb[8].mxu1 %v1128_v24  ;;  %v1510_v24 = vld [vmem:[#allocation13 + $0x108] sm:$0xff]  ;;  %v1511_v26 = vld [vmem:[#allocation13 + $0x110] sm:$0xff] }
 0x316   : > { %3051 = vmatprep.mubr.msk.f32.mxu1 %vm4344_vm0, %v4345_v1  ;;  %3608 = vmatpush3.bf16.msra.mxu1 %v3607_v51  ;;  %v1512_v28 = vld [vmem:[#allocation13 + $0x118] sm:$0xff] }
 0x317   : > { %v1129_v29 = vmax.f32 %v1122_v27, 0.0  ;;  %3609 = vmatprep.subr.bf16.mxu1 %v4343_v0 }
 0x319   : > { %3052 = vmatmul.mubr.f32.gmra.mrb[10].mxu1 %v1129_v29  ;;  %v3625_v29 = vpack.c.bf16 %v1512_v28, %v1511_v26  ;;  %v1640_v28 = vld [vmem:[#allocation15 + $0x158] sm:$0xff] }
 0x31a   : > { %3133 = vmatprep.mubr.msk.f32.mxu1 %vm4344_vm0, %v4345_v1  ;;  %3611 = vmatpush3.bf16.msra.mxu1 %v3610_v54 }
 0x31b   : > { %3612 = vmatprep.subr.bf16.mxu1 %v4343_v0 }
 0x31e   : > { %3614 = vmatpush3.bf16.msra.mxu1 %v3613_v57 }
 0x31f   : > { %3615 = vmatprep.subr.bf16.mxu1 %v4343_v0 }
 0x322   : > { %3617 = vmatpush3.bf16.msra.mxu1 %v3616_v60 }
 0x323   : > { %3618 = vmatprep.subr.bf16.mxu1 %v4343_v0 }
 0x326   : > { %3620 = vmatpush3.bf16.msra.mxu1 %v3619_v23  ;;  %v3655_v23 = vpack.c.bf16 %v1636_v22, %v1635_v21 }
 0x327   : > { %3645 = vmatprep.subr.bf16.mxu1 %v4343_v0 }
 0x3dc   : > { %v1212_v61 = vpop.f32.mrb[2].mxu1 }
 0x3dd   : > { %v1236_v63 = vadd.f32 %v1212_v61, %v4834_v25  ;;  %v3041_v3 = vpop.f32.mrb[3].mxu1 }
 0x3df   : > { %v4889_v4 = vadd.f32 %v2609_v62, %v1236_v63 }
 0x3e0   : > { %v1217_v5 = vpop.f32.mrb[4].mxu1 }
 0x3e1   : > { %v1253_v6 = vmax.f32 %v4889_v4, 0.0  ;;  %v1237_v7 = vadd.f32 %v1217_v5, %v4837_v33  ;;  %v3044_v8 = vpop.f32.mrb[5].mxu1 }
 0x3e2   : > { %v1522_v8 = vld [vmem:[#allocation13 + $0x168] sm:$0xff] }
 0x3e3   : > { %v4893_v9 = vadd.f32 %v2609_v62, %v1237_v7  ;;  %3087 = vmatmul.mubr.f32.vlgmr.msra.gmra.mrb[12].mxu0 %v1253_v6  ;;  %v1521_v7 = vld [vmem:[#allocation13 + $0x160] sm:$0xff] }
 0x3e4   : > { %v1222_v10 = vpop.f32.mrb[6].mxu1  ;;  %3089 = vmatprep.mubr.msk.f32.mxu0 %vm4344_vm0, %v4345_v1 }
 0x3e5   : > { %v1238_v11 = vadd.f32 %v1222_v10, %v4842_v40  ;;  %v3047_v12 = vpop.f32.mrb[7].mxu1  ;;  %v1254_v25 = vmax.f32 %v4893_v9, 0.0  ;;  %v3640_v10 = vpack.c.bf16 %v1522_v8, %v1521_v7  ;;  %v1763_v7 = vld [vmem:[#allocation13 + $0x1a0] sm:$0xff]  ;;  %v1764_v8 = vld [vmem:[#allocation13 + $0x1a8] sm:$0xff] }
 0x3e6   : > { %v1524_v12 = vld [vmem:[#allocation13 + $0x178] sm:$0xff] }
 0x3e7   : > { %v4899_v13 = vadd.f32 %v2609_v62, %v1238_v11  ;;  %3090 = vmatmul.mubr.f32.gmra.mrb[14].mxu0 %v1254_v25  ;;  %v1523_v11 = vld [vmem:[#allocation13 + $0x170] sm:$0xff] }
 0x3e8   : > { %v1227_v2 = vpop.f32.mrb[8].mxu1  ;;  %3092 = vmatprep.mubr.msk.f32.mxu0 %vm4344_vm0, %v4345_v1  ;;  %v3643_v25 = vpack.c.bf16 %v1524_v12, %v1523_v11  ;;  %v1765_v11 = vld [vmem:[#allocation13 + $0x1b0] sm:$0xff]  ;;  %v1766_v12 = vld [vmem:[#allocation13 + $0x1b8] sm:$0xff] }
 0x3e9   : > { %v1239_v33 = vadd.f32 %v1227_v2, %v4846_v42  ;;  %v3050_v14 = vpop.f32.mrb[9].mxu1  ;;  %v1255_v15 = vmax.f32 %v4899_v13, 0.0  ;;  %v1629_v2 = vld [vmem:[#allocation15 + $0x100] sm:$0xff] }
 0x3ea   : > { %v1631_v14 = vld [vmem:[#allocation15 + $0x110] sm:$0xff] }
 0x3eb   : > { %v4905_v16 = vadd.f32 %v2609_v62, %v1239_v33  ;;  %3093 = vmatmul.mubr.f32.gmra.mrb[16].mxu0 %v1255_v15  ;;  %v1630_v33 = vld [vmem:[#allocation15 + $0x108] sm:$0xff] }
 0x3ec   : > { %v1232_v17 = vpop.f32.mrb[10].mxu1  ;;  %3095 = vmatprep.mubr.msk.f32.mxu0 %vm4344_vm0, %v4345_v1  ;;  %v3646_v15 = vpack.c.bf16 %v1630_v33, %v1629_v2  ;;  %v1767_v2 = vld [vmem:[#allocation13 + $0x1c0] sm:$0xff]  ;;  %v1768_v33 = vld [vmem:[#allocation13 + $0x1c8] sm:$0xff] }
 0x3ed   : > { %v1240_v40 = vadd.f32 %v1232_v17, %v4851_v46  ;;  %v3053_v18 = vpop.f32.mrb[11].mxu1  ;;  %v1256_v19 = vmax.f32 %v4905_v16, 0.0  ;;  %v1509_v46 = vld [vmem:[#allocation13 + $0x100] sm:$0xff]  ;;  %v1632_v17 = vld [vmem:[#allocation15 + $0x118] sm:$0xff] }
 0x3ee   : > { %v3622_v27 = vpack.c.bf16 %v1510_v24, %v1509_v46  ;;  %v1633_v18 = vld [vmem:[#allocation15 + $0x120] sm:$0xff]  ;;  %v1638_v24 = vld [vmem:[#allocation15 + $0x148] sm:$0xff] }
 0x3ef   : > { %v4911_v20 = vadd.f32 %v2609_v62, %v1240_v40  ;;  %3096 = vmatmul.mubr.f32.gmra.mrb[18].mxu0 %v1256_v19  ;;  %v3649_v40 = vpack.c.bf16 %v1632_v17, %v1631_v14  ;;  %v1634_v19 = vld [vmem:[#allocation15 + $0x128] sm:$0xff]  ;;  %v1637_v46 = vld [vmem:[#allocation15 + $0x140] sm:$0xff]  ;;  %v3682_v14 = vpack.c.bf16 %v1768_v33, %v1767_v2  ;;  %v1770_v17 = vld [vmem:[#allocation13 + $0x1d8] sm:$0xff] }
 0x3f0   : > { %3098 = vmatprep.mubr.msk.f32.mxu0 %vm4344_vm0, %v4345_v1  ;;  %3623 = vmatpush3.bf16.msra.mxu0 %v3622_v27  ;;  %v3658_v26 = vpack.c.bf16 %v1638_v24, %v1637_v46  ;;  %v1639_v27 = vld [vmem:[#allocation15 + $0x150] sm:$0xff] }
 0x3f1   : > { %v1257_v42 = vmax.f32 %v4911_v20, 0.0  ;;  %3624 = vmatprep.subr.bf16.mxu0 %v4343_v0 }
 0x3f3   : > { %3099 = vmatmul.mubr.f32.gmra.mrb[20].mxu0 %v1257_v42  ;;  %v3652_v42 = vpack.c.bf16 %v1634_v19, %v1633_v18  ;;  %v2614_v18 = vld [vmem:[%s5262_s27 + $0x2] ss:$0 sm:$0xff] }
 0x3f4   : > { %3180 = vmatprep.mubr.msk.f32.mxu0 %vm4344_vm0, %v4345_v1  ;;  %3626 = vmatpush3.bf16.msra.mxu0 %v3625_v29  ;;  %v3661_v29 = vpack.c.bf16 %v1640_v28, %v1639_v27 }
 0x3f5   : > { %3627 = vmatprep.subr.bf16.mxu0 %v4343_v0 }
 0x3f8   : > { %3629 = vmatpush3.bf16.msra.mxu0 %v3628_v32  ;;  %v3664_v32 = vpack.c.bf16 %v1642_v31, %v1641_v30 }
 0x3f9   : > { %3630 = vmatprep.subr.bf16.mxu0 %v4343_v0 }
 0x3fc   : > { %3632 = vmatpush3.bf16.msra.mxu0 %v3631_v36 }
 0x3fd   : > { %3633 = vmatprep.subr.bf16.mxu0 %v4343_v0 }
 0x400   : > { %3635 = vmatpush3.bf16.msra.mxu0 %v3634_v39 }
 0x401   : > { %3636 = vmatprep.subr.bf16.mxu0 %v4343_v0 }
 0x404   : > { %3638 = vmatpush3.bf16.msra.mxu0 %v3637_v44 }
 0x405   : > { %3639 = vmatprep.subr.bf16.mxu0 %v4343_v0 }
 0x408   : > { %3641 = vmatpush3.bf16.msra.mxu0 %v3640_v10  ;;  %v3676_v10 = vpack.c.bf16 %v1764_v8, %v1763_v7  ;;  %v1891_v7 = vld [vmem:[#allocation15 + $0x1e0] sm:$0xff]  ;;  %v1892_v8 = vld [vmem:[#allocation15 + $0x1e8] sm:$0xff] }
 0x409   : > { %3642 = vmatprep.subr.bf16.mxu0 %v4343_v0 }
 0x40c   : > { %3644 = vmatpush3.bf16.msra.mxu0 %v3643_v25  ;;  %v3679_v25 = vpack.c.bf16 %v1766_v12, %v1765_v11  ;;  %v2615_v12 = vld [vmem:[#allocation16 + $0x2] ss:$0 sm:$0xff] }
 0x40d   : > { %3669 = vmatprep.subr.bf16.mxu0 %v4343_v0 }
 0x4b6   : > { %v1349_v47 = vpop.f32.mrb[12].mxu0 }
 0x4b7   : > { %v1350_v48 = vadd.f32 %v2611_v45, %v1349_v47  ;;  %v3088_v49 = vpop.f32.mrb[13].mxu0 }
 0x4b9   : > { %v1373_v50 = vmax.f32 %v1350_v48, 0.0 }
 0x4ba   : > { %v1354_v51 = vpop.f32.mrb[14].mxu0 }
 0x4bb   : > { %v1355_v52 = vadd.f32 %v2611_v45, %v1354_v51  ;;  %v3091_v53 = vpop.f32.mrb[15].mxu0  ;;  %3134 = vmatmul.mubr.f32.vlgmr.msra.gmra.mrb[12].mxu1 %v1373_v50 }
 0x4bc   : > { %3136 = vmatprep.mubr.msk.f32.mxu1 %vm4344_vm0, %v4345_v1  ;;  %3647 = vmatpush3.bf16.msra.mxu1 %v3646_v15  ;;  %v1769_v15 = vld [vmem:[#allocation13 + $0x1d0] sm:$0xff] }
 0x4bd   : > { %v1374_v54 = vmax.f32 %v1355_v52, 0.0  ;;  %3648 = vmatprep.subr.bf16.mxu1 %v4343_v0 }
 0x4be   : > { %v1359_v55 = vpop.f32.mrb[16].mxu0 }
 0x4bf   : > { %v1360_v56 = vadd.f32 %v2611_v45, %v1359_v55  ;;  %v3094_v57 = vpop.f32.mrb[17].mxu0  ;;  %3137 = vmatmul.mubr.f32.gmra.mrb[14].mxu1 %v1374_v54 }
 0x4c0   : > { %3139 = vmatprep.mubr.msk.f32.mxu1 %vm4344_vm0, %v4345_v1  ;;  %3650 = vmatpush3.bf16.msra.mxu1 %v3649_v40  ;;  %v3685_v40 = vpack.c.bf16 %v1770_v17, %v1769_v15 }
 0x4c1   : > { %v1375_v58 = vmax.f32 %v1360_v56, 0.0  ;;  %3651 = vmatprep.subr.bf16.mxu1 %v4343_v0 }
 0x4c2   : > { %v1364_v59 = vpop.f32.mrb[18].mxu0 }
 0x4c3   : > { %v1365_v60 = vadd.f32 %v2611_v45, %v1364_v59  ;;  %v3097_v61 = vpop.f32.mrb[19].mxu0  ;;  %3140 = vmatmul.mubr.f32.gmra.mrb[16].mxu1 %v1375_v58  ;;  %v1643_v59 = vld [vmem:[#allocation15 + $0x170] sm:$0xff] }
 0x4c4   : > { %3142 = vmatprep.mubr.msk.f32.mxu1 %vm4344_vm0, %v4345_v1  ;;  %3653 = vmatpush3.bf16.msra.mxu1 %v3652_v42 }
 0x4c5   : > { %v1376_v62 = vmax.f32 %v1365_v60, 0.0  ;;  %3654 = vmatprep.subr.bf16.mxu1 %v4343_v0  ;;  %v1644_v60 = vld [vmem:[#allocation15 + $0x178] sm:$0xff] }
 0x4c6   : > { %v1369_v63 = vpop.f32.mrb[20].mxu0  ;;  %v3667_v61 = vpack.c.bf16 %v1644_v60, %v1643_v59  ;;  %v1885_v59 = vld [vmem:[#allocation15 + $0x1b0] sm:$0xff]  ;;  %v1886_v60 = vld [vmem:[#allocation15 + $0x1b8] sm:$0xff] }
 0x4c7   : > { %v1370_v3 = vadd.f32 %v2611_v45, %v1369_v63  ;;  %v3100_v5 = vpop.f32.mrb[21].mxu0  ;;  %3143 = vmatmul.mubr.f32.gmra.mrb[18].mxu1 %v1376_v62  ;;  %v1760_v62 = vld [vmem:[#allocation13 + $0x188] sm:$0xff]  ;;  %v1761_v63 = vld [vmem:[#allocation13 + $0x190] sm:$0xff] }
 0x4c8   : > { %3145 = vmatprep.mubr.msk.f32.mxu1 %vm4344_vm0, %v4345_v1  ;;  %3656 = vmatpush3.bf16.msra.mxu1 %v3655_v23  ;;  %v1762_v5 = vld [vmem:[#allocation13 + $0x198] sm:$0xff] }
 0x4c9   : > { %v1377_v6 = vmax.f32 %v1370_v3, 0.0  ;;  %3657 = vmatprep.subr.bf16.mxu1 %v4343_v0 }
 0x4cb   : > { %3146 = vmatmul.mubr.f32.gmra.mrb[20].mxu1 %v1377_v6  ;;  %v3673_v6 = vpack.c.bf16 %v1762_v5, %v1761_v63  ;;  %v1890_v5 = vld [vmem:[#allocation15 + $0x1d8] sm:$0xff] }
 0x4cc   : > { %3227 = vmatprep.mubr.msk.f32.mxu1 %vm4344_vm0, %v4345_v1  ;;  %3659 = vmatpush3.bf16.msra.mxu1 %v3658_v26 }
 0x4cd   : > { %3660 = vmatprep.subr.bf16.mxu1 %v4343_v0 }
 0x4d0   : > { %3662 = vmatpush3.bf16.msra.mxu1 %v3661_v29 }
 0x4d1   : > { %3663 = vmatprep.subr.bf16.mxu1 %v4343_v0 }
 0x4d4   : > { %3665 = vmatpush3.bf16.msra.mxu1 %v3664_v32 }
 0x4d5   : > { %3666 = vmatprep.subr.bf16.mxu1 %v4343_v0 }
 0x4d8   : > { %3668 = vmatpush3.bf16.msra.mxu1 %v3667_v61  ;;  %v3703_v61 = vpack.c.bf16 %v1886_v60, %v1885_v59 }
 0x4d9   : > { %3693 = vmatprep.subr.bf16.mxu1 %v4343_v0 }
 0x58e   : > { %v1461_v34 = vpop.f32.mrb[12].mxu1 }
 0x58f   : > { %v1485_v36 = vadd.f32 %v1461_v34, %v4889_v4  ;;  %v3135_v37 = vpop.f32.mrb[13].mxu1 }
 0x591   : > { %v4948_v38 = vadd.f32 %v2612_v35, %v1485_v36 }
 0x592   : > { %v1466_v39 = vpop.f32.mrb[14].mxu1 }
 0x593   : > { %v1503_v41 = vmax.f32 %v4948_v38, 0.0  ;;  %v1486_v43 = vadd.f32 %v1466_v39, %v4893_v9  ;;  %v3138_v44 = vpop.f32.mrb[15].mxu1 }
 0x594   : > { %v1772_v44 = vld [vmem:[#allocation13 + $0x1e8] sm:$0xff] }
 0x595   : > { %v4952_v45 = vadd.f32 %v2612_v35, %v1486_v43  ;;  %3181 = vmatmul.mubr.f32.vlgmr.msra.gmra.mrb[22].mxu0 %v1503_v41  ;;  %v1771_v43 = vld [vmem:[#allocation13 + $0x1e0] sm:$0xff] }
 0x596   : > { %v1471_v47 = vpop.f32.mrb[16].mxu1  ;;  %3183 = vmatprep.mubr.msk.f32.mxu0 %vm4344_vm0, %v4345_v1 }
 0x597   : > { %v1487_v48 = vadd.f32 %v1471_v47, %v4899_v13  ;;  %v3141_v49 = vpop.f32.mrb[17].mxu1  ;;  %v1504_v4 = vmax.f32 %v4952_v45, 0.0  ;;  %v3688_v47 = vpack.c.bf16 %v1772_v44, %v1771_v43  ;;  %v2013_v43 = vld [vmem:[#allocation13 + $0x220] sm:$0xff]  ;;  %v2014_v44 = vld [vmem:[#allocation13 + $0x228] sm:$0xff] }
 0x598   : > { %v1774_v49 = vld [vmem:[#allocation13 + $0x1f8] sm:$0xff] }
 0x599   : > { %v4958_v50 = vadd.f32 %v2612_v35, %v1487_v48  ;;  %3184 = vmatmul.mubr.f32.gmra.mrb[24].mxu0 %v1504_v4  ;;  %v1773_v48 = vld [vmem:[#allocation13 + $0x1f0] sm:$0xff] }
 0x59a   : > { %v1476_v51 = vpop.f32.mrb[18].mxu1  ;;  %3186 = vmatprep.mubr.msk.f32.mxu0 %vm4344_vm0, %v4345_v1  ;;  %v3691_v4 = vpack.c.bf16 %v1774_v49, %v1773_v48  ;;  %v2015_v48 = vld [vmem:[#allocation13 + $0x230] sm:$0xff]  ;;  %v2016_v49 = vld [vmem:[#allocation13 + $0x238] sm:$0xff] }
 0x59b   : > { %v1488_v9 = vadd.f32 %v1476_v51, %v4905_v16  ;;  %v3144_v52 = vpop.f32.mrb[19].mxu1  ;;  %v1505_v53 = vmax.f32 %v4958_v50, 0.0  ;;  %v1879_v51 = vld [vmem:[#allocation15 + $0x180] sm:$0xff] }
 0x59c   : > { %v1881_v52 = vld [vmem:[#allocation15 + $0x190] sm:$0xff] }
 0x59d   : > { %v4964_v54 = vadd.f32 %v2612_v35, %v1488_v9  ;;  %3187 = vmatmul.mubr.f32.gmra.mrb[26].mxu0 %v1505_v53  ;;  %v1880_v9 = vld [vmem:[#allocation15 + $0x188] sm:$0xff] }
 0x59e   : > { %v1481_v55 = vpop.f32.mrb[20].mxu1  ;;  %3189 = vmatprep.mubr.msk.f32.mxu0 %vm4344_vm0, %v4345_v1  ;;  %v3694_v53 = vpack.c.bf16 %v1880_v9, %v1879_v51  ;;  %v2017_v51 = vld [vmem:[#allocation13 + $0x240] sm:$0xff]  ;;  %v2018_v9 = vld [vmem:[#allocation13 + $0x248] sm:$0xff] }
 0x59f   : > { %v1489_v13 = vadd.f32 %v1481_v55, %v4911_v20  ;;  %v3147_v56 = vpop.f32.mrb[21].mxu1  ;;  %v1506_v57 = vmax.f32 %v4964_v54, 0.0  ;;  %v1759_v20 = vld [vmem:[#allocation13 + $0x180] sm:$0xff]  ;;  %v1882_v55 = vld [vmem:[#allocation15 + $0x198] sm:$0xff] }
 0x5a0   : > { %v3670_v3 = vpack.c.bf16 %v1760_v62, %v1759_v20  ;;  %v1883_v56 = vld [vmem:[#allocation15 + $0x1a0] sm:$0xff]  ;;  %v1888_v62 = vld [vmem:[#allocation15 + $0x1c8] sm:$0xff] }
 0x5a1   : > { %v4970_v58 = vadd.f32 %v2612_v35, %v1489_v13  ;;  %3190 = vmatmul.mubr.f32.gmra.mrb[28].mxu0 %v1506_v57  ;;  %v3697_v13 = vpack.c.bf16 %v1882_v55, %v1881_v52  ;;  %v1884_v57 = vld [vmem:[#allocation15 + $0x1a8] sm:$0xff]  ;;  %v1887_v20 = vld [vmem:[#allocation15 + $0x1c0] sm:$0xff]  ;;  %v3730_v52 = vpack.c.bf16 %v2018_v9, %v2017_v51  ;;  %v2020_v55 = vld [vmem:[#allocation13 + $0x258] sm:$0xff] }
 0x5a2   : > { %3192 = vmatprep.mubr.msk.f32.mxu0 %vm4344_vm0, %v4345_v1  ;;  %3671 = vmatpush3.bf16.msra.mxu0 %v3670_v3  ;;  %v3706_v63 = vpack.c.bf16 %v1888_v62, %v1887_v20  ;;  %v1889_v3 = vld [vmem:[#allocation15 + $0x1d0] sm:$0xff] }
 0x5a3   : > { %v1507_v16 = vmax.f32 %v4970_v58, 0.0  ;;  %3672 = vmatprep.subr.bf16.mxu0 %v4343_v0 }
 0x5a5   : > { %3193 = vmatmul.mubr.f32.gmra.mrb[30].mxu0 %v1507_v16  ;;  %v3700_v16 = vpack.c.bf16 %v1884_v57, %v1883_v56  ;;  %v2617_v56 = vld [vmem:[%s5262_s27 + $0x3] ss:$0 sm:$0xff] }
 0x5a6   : > { %3274 = vmatprep.mubr.msk.f32.mxu0 %vm4344_vm0, %v4345_v1  ;;  %3674 = vmatpush3.bf16.msra.mxu0 %v3673_v6  ;;  %v3709_v6 = vpack.c.bf16 %v1890_v5, %v1889_v3 }
 0x5a7   : > { %3675 = vmatprep.subr.bf16.mxu0 %v4343_v0 }
 0x5aa   : > { %3677 = vmatpush3.bf16.msra.mxu0 %v3676_v10  ;;  %v3712_v10 = vpack.c.bf16 %v1892_v8, %v1891_v7 }
 0x5ab   : > { %3678 = vmatprep.subr.bf16.mxu0 %v4343_v0 }
 0x5ae   : > { %3680 = vmatpush3.bf16.msra.mxu0 %v3679_v25 }
 0x5af   : > { %3681 = vmatprep.subr.bf16.mxu0 %v4343_v0 }
 0x5b2   : > { %3683 = vmatpush3.bf16.msra.mxu0 %v3682_v14 }
 0x5b3   : > { %3684 = vmatprep.subr.bf16.mxu0 %v4343_v0 }
 0x5b6   : > { %3686 = vmatpush3.bf16.msra.mxu0 %v3685_v40 }
 0x5b7   : > { %3687 = vmatprep.subr.bf16.mxu0 %v4343_v0 }
 0x5ba   : > { %3689 = vmatpush3.bf16.msra.mxu0 %v3688_v47  ;;  %v3724_v47 = vpack.c.bf16 %v2014_v44, %v2013_v43  ;;  %v2141_v43 = vld [vmem:[#allocation15 + $0x260] sm:$0xff]  ;;  %v2142_v44 = vld [vmem:[#allocation15 + $0x268] sm:$0xff] }
 0x5bb   : > { %3690 = vmatprep.subr.bf16.mxu0 %v4343_v0 }
 0x5be   : > { %3692 = vmatpush3.bf16.msra.mxu0 %v3691_v4  ;;  %v3727_v4 = vpack.c.bf16 %v2016_v49, %v2015_v48  ;;  %v2618_v49 = vld [vmem:[#allocation16 + $0x3] ss:$0 sm:$0xff] }
 0x5bf   : > { %3717 = vmatprep.subr.bf16.mxu0 %v4343_v0 }
 0x668   : > { %v1599_v19 = vpop.f32.mrb[22].mxu0 }
 0x669   : > { %v1600_v42 = vadd.f32 %v2614_v18, %v1599_v19  ;;  %v3182_v21 = vpop.f32.mrb[23].mxu0 }
 0x66b   : > { %v1623_v22 = vmax.f32 %v1600_v42, 0.0 }
 0x66c   : > { %v1604_v23 = vpop.f32.mrb[24].mxu0 }
 0x66d   : > { %v1605_v46 = vadd.f32 %v2614_v18, %v1604_v23  ;;  %v3185_v24 = vpop.f32.mrb[25].mxu0  ;;  %3228 = vmatmul.mubr.f32.vlgmr.msra.gmra.mrb[22].mxu1 %v1623_v22 }
 0x66e   : > { %3230 = vmatprep.mubr.msk.f32.mxu1 %vm4344_vm0, %v4345_v1  ;;  %3695 = vmatpush3.bf16.msra.mxu1 %v3694_v53  ;;  %v2019_v53 = vld [vmem:[#allocation13 + $0x250] sm:$0xff] }
 0x66f   : > { %v1624_v26 = vmax.f32 %v1605_v46, 0.0  ;;  %3696 = vmatprep.subr.bf16.mxu1 %v4343_v0 }
 0x670   : > { %v1609_v27 = vpop.f32.mrb[26].mxu0 }
 0x671   : > { %v1610_v28 = vadd.f32 %v2614_v18, %v1609_v27  ;;  %v3188_v29 = vpop.f32.mrb[27].mxu0  ;;  %3231 = vmatmul.mubr.f32.gmra.mrb[24].mxu1 %v1624_v26 }
 0x672   : > { %3233 = vmatprep.mubr.msk.f32.mxu1 %vm4344_vm0, %v4345_v1  ;;  %3698 = vmatpush3.bf16.msra.mxu1 %v3697_v13  ;;  %v3733_v13 = vpack.c.bf16 %v2020_v55, %v2019_v53 }
 0x673   : > { %v1625_v30 = vmax.f32 %v1610_v28, 0.0  ;;  %3699 = vmatprep.subr.bf16.mxu1 %v4343_v0 }
 0x674   : > { %v1614_v31 = vpop.f32.mrb[28].mxu0 }
 0x675   : > { %v1615_v32 = vadd.f32 %v2614_v18, %v1614_v31  ;;  %v3191_v34 = vpop.f32.mrb[29].mxu0  ;;  %3234 = vmatmul.mubr.f32.gmra.mrb[26].mxu1 %v1625_v30  ;;  %v1893_v31 = vld [vmem:[#allocation15 + $0x1f0] sm:$0xff] }
 0x676   : > { %3236 = vmatprep.mubr.msk.f32.mxu1 %vm4344_vm0, %v4345_v1  ;;  %3701 = vmatpush3.bf16.msra.mxu1 %v3700_v16 }
 0x677   : > { %v1626_v35 = vmax.f32 %v1615_v32, 0.0  ;;  %3702 = vmatprep.subr.bf16.mxu1 %v4343_v0  ;;  %v1894_v32 = vld [vmem:[#allocation15 + $0x1f8] sm:$0xff] }
 0x678   : > { %v1619_v36 = vpop.f32.mrb[30].mxu0  ;;  %v3715_v34 = vpack.c.bf16 %v1894_v32, %v1893_v31  ;;  %v2135_v31 = vld [vmem:[#allocation15 + $0x230] sm:$0xff]  ;;  %v2136_v32 = vld [vmem:[#allocation15 + $0x238] sm:$0xff] }
 0x679   : > { %v1620_v37 = vadd.f32 %v2614_v18, %v1619_v36  ;;  %v3194_v39 = vpop.f32.mrb[31].mxu0  ;;  %3237 = vmatmul.mubr.f32.gmra.mrb[28].mxu1 %v1626_v35  ;;  %v2010_v35 = vld [vmem:[#allocation13 + $0x208] sm:$0xff]  ;;  %v2011_v36 = vld [vmem:[#allocation13 + $0x210] sm:$0xff] }
 0x67a   : > { %3239 = vmatprep.mubr.msk.f32.mxu1 %vm4344_vm0, %v4345_v1  ;;  %3704 = vmatpush3.bf16.msra.mxu1 %v3703_v61  ;;  %v2012_v39 = vld [vmem:[#allocation13 + $0x218] sm:$0xff] }
 0x67b   : > { %v1627_v41 = vmax.f32 %v1620_v37, 0.0  ;;  %3705 = vmatprep.subr.bf16.mxu1 %v4343_v0 }
 0x67d   : > { %3240 = vmatmul.mubr.f32.gmra.mrb[30].mxu1 %v1627_v41  ;;  %v3721_v41 = vpack.c.bf16 %v2012_v39, %v2011_v36  ;;  %v2140_v39 = vld [vmem:[#allocation15 + $0x258] sm:$0xff] }
 0x67e   : > { %3321 = vmatprep.mubr.msk.f32.mxu1 %vm4344_vm0, %v4345_v1  ;;  %3707 = vmatpush3.bf16.msra.mxu1 %v3706_v63 }
 0x67f   : > { %3708 = vmatprep.subr.bf16.mxu1 %v4343_v0 }
 0x682   : > { %3710 = vmatpush3.bf16.msra.mxu1 %v3709_v6 }
 0x683   : > { %3711 = vmatprep.subr.bf16.mxu1 %v4343_v0 }
 0x686   : > { %3713 = vmatpush3.bf16.msra.mxu1 %v3712_v10 }
 0x687   : > { %3714 = vmatprep.subr.bf16.mxu1 %v4343_v0 }
 0x68a   : > { %3716 = vmatpush3.bf16.msra.mxu1 %v3715_v34  ;;  %v3751_v34 = vpack.c.bf16 %v2136_v32, %v2135_v31 }
 0x68b   : > { %3741 = vmatprep.subr.bf16.mxu1 %v4343_v0 }
 0x740   : > { %v1711_v11 = vpop.f32.mrb[22].mxu1 }
 0x741   : > { %v1735_v25 = vadd.f32 %v1711_v11, %v4948_v38  ;;  %v3229_v2 = vpop.f32.mrb[23].mxu1 }
 0x743   : > { %v5007_v33 = vadd.f32 %v2615_v12, %v1735_v25 }
 0x744   : > { %v1716_v14 = vpop.f32.mrb[24].mxu1 }
 0x745   : > { %v1753_v15 = vmax.f32 %v5007_v33, 0.0  ;;  %v1736_v17 = vadd.f32 %v1716_v14, %v4952_v45  ;;  %v3232_v40 = vpop.f32.mrb[25].mxu1 }
 0x746   : > { %v2022_v40 = vld [vmem:[#allocation13 + $0x268] sm:$0xff] }
 0x747   : > { %v5011_v18 = vadd.f32 %v2615_v12, %v1736_v17  ;;  %3275 = vmatmul.mubr.f32.vlgmr.msra.gmra.mrb[32].mxu0 %v1753_v15  ;;  %v2021_v17 = vld [vmem:[#allocation13 + $0x260] sm:$0xff] }
 0x748   : > { %v1721_v19 = vpop.f32.mrb[26].mxu1  ;;  %3277 = vmatprep.mubr.msk.f32.mxu0 %vm4344_vm0, %v4345_v1 }
 0x749   : > { %v1737_v42 = vadd.f32 %v1721_v19, %v4958_v50  ;;  %v3235_v21 = vpop.f32.mrb[27].mxu1  ;;  %v1754_v38 = vmax.f32 %v5011_v18, 0.0  ;;  %v3736_v19 = vpack.c.bf16 %v2022_v40, %v2021_v17  ;;  %v2262_v17 = vld [vmem:[%s5263_s13 + $0x20] sm:$0xff]  ;;  %v2263_v40 = vld [vmem:[%s5263_s13 + $0x28] sm:$0xff] }
 0x74a   : > { %v2024_v21 = vld [vmem:[#allocation13 + $0x278] sm:$0xff] }
 0x74b   : > { %v5017_v22 = vadd.f32 %v2615_v12, %v1737_v42  ;;  %3278 = vmatmul.mubr.f32.gmra.mrb[34].mxu0 %v1754_v38  ;;  %v2023_v42 = vld [vmem:[#allocation13 + $0x270] sm:$0xff] }
 0x74c   : > { %v1726_v23 = vpop.f32.mrb[28].mxu1  ;;  %3280 = vmatprep.mubr.msk.f32.mxu0 %vm4344_vm0, %v4345_v1  ;;  %v3739_v38 = vpack.c.bf16 %v2024_v21, %v2023_v42  ;;  %v2264_v42 = vld [vmem:[%s5263_s13 + $0x30] sm:$0xff]  ;;  %v2265_v21 = vld [vmem:[%s5263_s13 + $0x38] sm:$0xff] }
 0x74d   : > { %v1738_v45 = vadd.f32 %v1726_v23, %v4964_v54  ;;  %v3238_v46 = vpop.f32.mrb[29].mxu1  ;;  %v1755_v24 = vmax.f32 %v5017_v22, 0.0  ;;  %v2129_v23 = vld [vmem:[#allocation15 + $0x200] sm:$0xff] }
 0x74e   : > { %v2131_v46 = vld [vmem:[#allocation15 + $0x210] sm:$0xff] }
 0x74f   : > { %v5023_v26 = vadd.f32 %v2615_v12, %v1738_v45  ;;  %3281 = vmatmul.mubr.f32.gmra.mrb[36].mxu0 %v1755_v24  ;;  %v2130_v45 = vld [vmem:[#allocation15 + $0x208] sm:$0xff] }
 0x750   : > { %v1731_v27 = vpop.f32.mrb[30].mxu1  ;;  %3283 = vmatprep.mubr.msk.f32.mxu0 %vm4344_vm0, %v4345_v1  ;;  %v3742_v24 = vpack.c.bf16 %v2130_v45, %v2129_v23  ;;  %v2266_v23 = vld [vmem:[%s5263_s13 + $0x40] sm:$0xff]  ;;  %v2267_v45 = vld [vmem:[%s5263_s13 + $0x48] sm:$0xff] }
 0x751   : > { %v1739_v50 = vadd.f32 %v1731_v27, %v4970_v58  ;;  %v3241_v28 = vpop.f32.mrb[31].mxu1  ;;  %v1756_v29 = vmax.f32 %v5023_v26, 0.0  ;;  %v2009_v58 = vld [vmem:[#allocation13 + $0x200] sm:$0xff]  ;;  %v2132_v27 = vld [vmem:[#allocation15 + $0x218] sm:$0xff] }
 0x752   : > { %v3718_v37 = vpack.c.bf16 %v2010_v35, %v2009_v58  ;;  %v2133_v28 = vld [vmem:[#allocation15 + $0x220] sm:$0xff]  ;;  %v2138_v35 = vld [vmem:[#allocation15 + $0x248] sm:$0xff] }
 0x753   : > { %v5029_v30 = vadd.f32 %v2615_v12, %v1739_v50  ;;  %3284 = vmatmul.mubr.f32.gmra.mrb[38].mxu0 %v1756_v29  ;;  %v3745_v50 = vpack.c.bf16 %v2132_v27, %v2131_v46  ;;  %v2134_v29 = vld [vmem:[#allocation15 + $0x228] sm:$0xff]  ;;  %v2137_v58 = vld [vmem:[#allocation15 + $0x240] sm:$0xff]  ;;  %v3778_v46 = vpack.c.bf16 %v2267_v45, %v2266_v23 }
 0x754   : > { %3286 = vmatprep.mubr.msk.f32.mxu0 %vm4344_vm0, %v4345_v1  ;;  %3719 = vmatpush3.bf16.msra.mxu0 %v3718_v37  ;;  %v3754_v36 = vpack.c.bf16 %v2138_v35, %v2137_v58  ;;  %v2139_v37 = vld [vmem:[#allocation15 + $0x250] sm:$0xff] }
 0x755   : > { %v1757_v54 = vmax.f32 %v5029_v30, 0.0  ;;  %3720 = vmatprep.subr.bf16.mxu0 %v4343_v0  ;;  %v2269_v27 = vld [vmem:[%s5263_s13 + $0x58] sm:$0xff] }
 0x757   : > { %3287 = vmatmul.mubr.f32.gmra.mrb[40].mxu0 %v1757_v54  ;;  %v3748_v54 = vpack.c.bf16 %v2134_v29, %v2133_v28  ;;  %v2620_v28 = vld [vmem:[%s5262_s27 + $0x4] ss:$0 sm:$0xff] }
 0x758   : > { %3368 = vmatprep.mubr.msk.f32.mxu0 %vm4344_vm0, %v4345_v1  ;;  %3722 = vmatpush3.bf16.msra.mxu0 %v3721_v41  ;;  %v3757_v41 = vpack.c.bf16 %v2140_v39, %v2139_v37 }
 0x759   : > { %3723 = vmatprep.subr.bf16.mxu0 %v4343_v0 }
 0x75c   : > { %3725 = vmatpush3.bf16.msra.mxu0 %v3724_v47  ;;  %v3760_v47 = vpack.c.bf16 %v2142_v44, %v2141_v43 }
 0x75d   : > { %3726 = vmatprep.subr.bf16.mxu0 %v4343_v0 }
 0x760   : > { %3728 = vmatpush3.bf16.msra.mxu0 %v3727_v4 }
 0x761   : > { %3729 = vmatprep.subr.bf16.mxu0 %v4343_v0 }
 0x764   : > { %3731 = vmatpush3.bf16.msra.mxu0 %v3730_v52 }
 0x765   : > { %3732 = vmatprep.subr.bf16.mxu0 %v4343_v0 }
 0x768   : > { %3734 = vmatpush3.bf16.msra.mxu0 %v3733_v13 }
 0x769   : > { %3735 = vmatprep.subr.bf16.mxu0 %v4343_v0 }
 0x76c   : > { %3737 = vmatpush3.bf16.msra.mxu0 %v3736_v19  ;;  %v3772_v19 = vpack.c.bf16 %v2263_v40, %v2262_v17 }
 0x76d   : > { %3738 = vmatprep.subr.bf16.mxu0 %v4343_v0 }
 0x770   : > { %3740 = vmatpush3.bf16.msra.mxu0 %v3739_v38  ;;  %v3775_v38 = vpack.c.bf16 %v2265_v21, %v2264_v42  ;;  %v2622_v21 = vld [vmem:[%s5264_s15] ss:$0 sm:$0xff] }
 0x771   : > { %3765 = vmatprep.subr.bf16.mxu0 %v4343_v0 }
 0x81a   : > { %v1849_v57 = vpop.f32.mrb[32].mxu0 }
 0x81b   : > { %v1850_v16 = vadd.f32 %v2617_v56, %v1849_v57  ;;  %v3276_v59 = vpop.f32.mrb[33].mxu0 }
 0x81d   : > { %v1873_v60 = vmax.f32 %v1850_v16, 0.0 }
 0x81e   : > { %v1854_v61 = vpop.f32.mrb[34].mxu0 }
 0x81f   : > { %v1855_v20 = vadd.f32 %v2617_v56, %v1854_v61  ;;  %v3279_v62 = vpop.f32.mrb[35].mxu0  ;;  %3322 = vmatmul.mubr.f32.vlgmr.msra.gmra.mrb[32].mxu1 %v1873_v60 }
 0x820   : > { %3324 = vmatprep.mubr.msk.f32.mxu1 %vm4344_vm0, %v4345_v1  ;;  %3743 = vmatpush3.bf16.msra.mxu1 %v3742_v24  ;;  %v2268_v24 = vld [vmem:[%s5263_s13 + $0x50] sm:$0xff] }
 0x821   : > { %v1874_v63 = vmax.f32 %v1855_v20, 0.0  ;;  %3744 = vmatprep.subr.bf16.mxu1 %v4343_v0 }
 0x822   : > { %v1859_v3 = vpop.f32.mrb[36].mxu0 }
 0x823   : > { %v1860_v5 = vadd.f32 %v2617_v56, %v1859_v3  ;;  %v3282_v6 = vpop.f32.mrb[37].mxu0  ;;  %3325 = vmatmul.mubr.f32.gmra.mrb[34].mxu1 %v1874_v63 }
 0x824   : > { %3327 = vmatprep.mubr.msk.f32.mxu1 %vm4344_vm0, %v4345_v1  ;;  %3746 = vmatpush3.bf16.msra.mxu1 %v3745_v50  ;;  %v3781_v50 = vpack.c.bf16 %v2269_v27, %v2268_v24 }
 0x825   : > { %v1875_v7 = vmax.f32 %v1860_v5, 0.0  ;;  %3747 = vmatprep.subr.bf16.mxu1 %v4343_v0 }
 0x826   : > { %v1864_v8 = vpop.f32.mrb[38].mxu0 }
 0x827   : > { %v1865_v10 = vadd.f32 %v2617_v56, %v1864_v8  ;;  %v3285_v11 = vpop.f32.mrb[39].mxu0  ;;  %3328 = vmatmul.mubr.f32.gmra.mrb[36].mxu1 %v1875_v7  ;;  %v2143_v8 = vld [vmem:[#allocation15 + $0x270] sm:$0xff] }
 0x828   : > { %3330 = vmatprep.mubr.msk.f32.mxu1 %vm4344_vm0, %v4345_v1  ;;  %3749 = vmatpush3.bf16.msra.mxu1 %v3748_v54 }
 0x829   : > { %v1876_v12 = vmax.f32 %v1865_v10, 0.0  ;;  %3750 = vmatprep.subr.bf16.mxu1 %v4343_v0  ;;  %v2144_v10 = vld [vmem:[#allocation15 + $0x278] sm:$0xff] }
 0x82a   : > { %v1869_v25 = vpop.f32.mrb[40].mxu0  ;;  %v3763_v11 = vpack.c.bf16 %v2144_v10, %v2143_v8 }
 0x82b   : > { %v1870_v2 = vadd.f32 %v2617_v56, %v1869_v25  ;;  %v3288_v14 = vpop.f32.mrb[41].mxu0  ;;  %3331 = vmatmul.mubr.f32.gmra.mrb[38].mxu1 %v1876_v12  ;;  %v2259_v12 = vld [vmem:[%s5263_s13 + $0x8] sm:$0xff]  ;;  %v2260_v25 = vld [vmem:[%s5263_s13 + $0x10] sm:$0xff] }
 0x82c   : > { %3333 = vmatprep.mubr.msk.f32.mxu1 %vm4344_vm0, %v4345_v1  ;;  %3752 = vmatpush3.bf16.msra.mxu1 %v3751_v34  ;;  %v2261_v14 = vld [vmem:[%s5263_s13 + $0x18] sm:$0xff] }
 0x82d   : > { %v1877_v15 = vmax.f32 %v1870_v2, 0.0  ;;  %3753 = vmatprep.subr.bf16.mxu1 %v4343_v0 }
 0x82f   : > { %3334 = vmatmul.mubr.f32.gmra.mrb[40].mxu1 %v1877_v15  ;;  %v3769_v15 = vpack.c.bf16 %v2261_v14, %v2260_v25 }
 0x830   : > { %3415 = vmatprep.mubr.msk.f32.mxu1 %vm4344_vm0, %v4345_v1  ;;  %3755 = vmatpush3.bf16.msra.mxu1 %v3754_v36 }
 0x831   : > { %3756 = vmatprep.subr.bf16.mxu1 %v4343_v0 }
 0x834   : > { %3758 = vmatpush3.bf16.msra.mxu1 %v3757_v41 }
 0x835   : > { %3759 = vmatprep.subr.bf16.mxu1 %v4343_v0 }
 0x838   : > { %3761 = vmatpush3.bf16.msra.mxu1 %v3760_v47 }
 0x839   : > { %3762 = vmatprep.subr.bf16.mxu1 %v4343_v0 }
 0x83c   : > { %3764 = vmatpush3.bf16.msra.mxu1 %v3763_v11 }
 0x83d   : > { %3789 = vmatprep.subr.bf16.mxu1 %v4343_v0 }
 0x8f2   : > { %v1961_v48 = vpop.f32.mrb[32].mxu1 }
 0x8f3   : > { %v1985_v4 = vadd.f32 %v1961_v48, %v5007_v33  ;;  %v3323_v51 = vpop.f32.mrb[33].mxu1 }
 0x8f5   : > { %v5066_v9 = vadd.f32 %v2618_v49, %v1985_v4 }
 0x8f6   : > { %v1966_v52 = vpop.f32.mrb[34].mxu1 }
 0x8f7   : > { %v2003_v53 = vmax.f32 %v5066_v9, 0.0  ;;  %v1986_v55 = vadd.f32 %v1966_v52, %v5011_v18  ;;  %v3326_v13 = vpop.f32.mrb[35].mxu1 }
 0x8f8   : > { %v2271_v13 = vld [vmem:[%s5263_s13 + $0x68] sm:$0xff] }
 0x8f9   : > { %v5070_v56 = vadd.f32 %v2618_v49, %v1986_v55  ;;  %3369 = vmatmul.mubr.f32.vlgmr.msra.gmra.mrb[42].mxu0 %v2003_v53  ;;  %v2270_v55 = vld [vmem:[%s5263_s13 + $0x60] sm:$0xff] }
 0x8fa   : > { %v1971_v57 = vpop.f32.mrb[36].mxu1  ;;  %3371 = vmatprep.mubr.msk.f32.mxu0 %vm4344_vm0, %v4345_v1 }
 0x8fb   : > { %v1987_v16 = vadd.f32 %v1971_v57, %v5017_v22  ;;  %v3329_v59 = vpop.f32.mrb[37].mxu1  ;;  %v2004_v33 = vmax.f32 %v5070_v56, 0.0  ;;  %v3784_v57 = vpack.c.bf16 %v2271_v13, %v2270_v55 }
 0x8fc   : > { %v2273_v59 = vld [vmem:[%s5263_s13 + $0x78] sm:$0xff] }
 0x8fd   : > { %v5076_v60 = vadd.f32 %v2618_v49, %v1987_v16  ;;  %3372 = vmatmul.mubr.f32.gmra.mrb[44].mxu0 %v2004_v33  ;;  %v2272_v16 = vld [vmem:[%s5263_s13 + $0x70] sm:$0xff] }
 0x8fe   : > { %v1976_v61 = vpop.f32.mrb[38].mxu1  ;;  %3374 = vmatprep.mubr.msk.f32.mxu0 %vm4344_vm0, %v4345_v1  ;;  %v3787_v33 = vpack.c.bf16 %v2273_v59, %v2272_v16 }
 0x8ff   : > { %v1988_v18 = vadd.f32 %v1976_v61, %v5023_v26  ;;  %v3332_v20 = vpop.f32.mrb[39].mxu1  ;;  %v2005_v62 = vmax.f32 %v5076_v60, 0.0 }
 0x901   : > { %v5082_v63 = vadd.f32 %v2618_v49, %v1988_v18  ;;  %3375 = vmatmul.mubr.f32.gmra.mrb[46].mxu0 %v2005_v62  ;;  %v2621_v18 = vld [vmem:[#allocation16 + $0x4] ss:$0 sm:$0xff] }
 0x902   : > { %v1981_v3 = vpop.f32.mrb[40].mxu1  ;;  %3377 = vmatprep.mubr.msk.f32.mxu0 %vm4344_vm0, %v4345_v1 }
 0x903   : > { %v1989_v22 = vadd.f32 %v1981_v3, %v5029_v30  ;;  %v3335_v5 = vpop.f32.mrb[41].mxu1  ;;  %v2006_v6 = vmax.f32 %v5082_v63, 0.0  ;;  %v2258_v30 = vld [vmem:[%s5263_s13] sm:$0xff] }
 0x904   : > { %v3766_v2 = vpack.c.bf16 %v2259_v12, %v2258_v30 }
 0x905   : > { %v5088_v7 = vadd.f32 %v2618_v49, %v1989_v22  ;;  %3378 = vmatmul.mubr.f32.gmra.mrb[48].mxu0 %v2006_v6 }
 0x906   : > { %3380 = vmatprep.mubr.msk.f32.mxu0 %vm4344_vm0, %v4345_v1  ;;  %3767 = vmatpush3.bf16.msra.mxu0 %v3766_v2 }
 0x907   : > { %v2007_v26 = vmax.f32 %v5088_v7, 0.0  ;;  %3768 = vmatprep.subr.bf16.mxu0 %v4343_v0 }
 0x909   : > { %3381 = vmatmul.mubr.f32.gmra.mrb[50].mxu0 %v2007_v26 }
 0x90a   : > { %3462 = vmatprep.mubr.msk.f32.mxu0 %vm4344_vm0, %v4345_v1  ;;  %3770 = vmatpush3.bf16.msra.mxu0 %v3769_v15 }
 0x90b   : > { %3771 = vmatprep.subr.bf16.mxu0 %v4343_v0 }
 0x90e   : > { %3773 = vmatpush3.bf16.msra.mxu0 %v3772_v19 }
 0x90f   : > { %3774 = vmatprep.subr.bf16.mxu0 %v4343_v0 }
 0x912   : > { %3776 = vmatpush3.bf16.msra.mxu0 %v3775_v38 }
 0x913   : > { %3777 = vmatprep.subr.bf16.mxu0 %v4343_v0 }
 0x916   : > { %3779 = vmatpush3.bf16.msra.mxu0 %v3778_v46 }
 0x917   : > { %3780 = vmatprep.subr.bf16.mxu0 %v4343_v0 }
 0x91a   : > { %3782 = vmatpush3.bf16.msra.mxu0 %v3781_v50 }
 0x91b   : > { %3783 = vmatprep.subr.bf16.mxu0 %v4343_v0 }
 0x91e   : > { %3785 = vmatpush3.bf16.msra.mxu0 %v3784_v57 }
 0x91f   : > { %3786 = vmatprep.subr.bf16.mxu0 %v4343_v0 }
 0x922   : > { %3788 = vmatpush3.bf16.msra.mxu0 %v3787_v33 }
 0x9cc   : > { %v2099_v29 = vpop.f32.mrb[42].mxu0 }
 0x9cd   : > { %v2100_v54 = vadd.f32 %v2620_v28, %v2099_v29  ;;  %v3370_v31 = vpop.f32.mrb[43].mxu0 }
 0x9cf   : > { %v2123_v32 = vmax.f32 %v2100_v54, 0.0 }
 0x9d0   : > { %v2104_v34 = vpop.f32.mrb[44].mxu0 }
 0x9d1   : > { %v2105_v58 = vadd.f32 %v2620_v28, %v2104_v34  ;;  %v3373_v35 = vpop.f32.mrb[45].mxu0  ;;  %3416 = vmatmul.mubr.f32.vlgmr.msra.gmra.mrb[42].mxu1 %v2123_v32 }
 0x9d2   : > { %3418 = vmatprep.mubr.msk.f32.mxu1 %vm4344_vm0, %v4345_v1  ;;  %3797 = vmatpush3.bf16.msra.mxu1 %v3766_v2 }
 0x9d3   : > { %v2124_v36 = vmax.f32 %v2105_v58, 0.0  ;;  %3790 = vmatprep.subr.bf16.mxu1 %v4343_v0 }
 0x9d4   : > { %v2109_v37 = vpop.f32.mrb[46].mxu0 }
 0x9d5   : > { %v2110_v39 = vadd.f32 %v2620_v28, %v2109_v37  ;;  %v3376_v41 = vpop.f32.mrb[47].mxu0  ;;  %3419 = vmatmul.mubr.f32.gmra.mrb[44].mxu1 %v2124_v36 }
 0x9d6   : > { %3421 = vmatprep.mubr.msk.f32.mxu1 %vm4344_vm0, %v4345_v1  ;;  %3798 = vmatpush3.bf16.msra.mxu1 %v3769_v15 }
 0x9d7   : > { %v2125_v43 = vmax.f32 %v2110_v39, 0.0  ;;  %3791 = vmatprep.subr.bf16.mxu1 %v4343_v0 }
 0x9d8   : > { %v2114_v44 = vpop.f32.mrb[48].mxu0 }
 0x9d9   : > { %v2115_v47 = vadd.f32 %v2620_v28, %v2114_v44  ;;  %v3379_v48 = vpop.f32.mrb[49].mxu0  ;;  %3422 = vmatmul.mubr.f32.gmra.mrb[46].mxu1 %v2125_v43 }
 0x9da   : > { %3424 = vmatprep.mubr.msk.f32.mxu1 %vm4344_vm0, %v4345_v1  ;;  %3799 = vmatpush3.bf16.msra.mxu1 %v3772_v19 }
 0x9db   : > { %v2126_v49 = vmax.f32 %v2115_v47, 0.0  ;;  %3792 = vmatprep.subr.bf16.mxu1 %v4343_v0 }
 0x9dc   : > { %v2119_v4 = vpop.f32.mrb[50].mxu0 }
 0x9dd   : > { %v2120_v51 = vadd.f32 %v2620_v28, %v2119_v4  ;;  %v3382_v52 = vpop.f32.mrb[51].mxu0  ;;  %3425 = vmatmul.mubr.f32.gmra.mrb[48].mxu1 %v2126_v49 }
 0x9de   : > { %3427 = vmatprep.mubr.msk.f32.mxu1 %vm4344_vm0, %v4345_v1  ;;  %3800 = vmatpush3.bf16.msra.mxu1 %v3775_v38 }
 0x9df   : > { %v2127_v53 = vmax.f32 %v2120_v51, 0.0  ;;  %3793 = vmatprep.subr.bf16.mxu1 %v4343_v0 }
 0x9e1   : > { %3428 = vmatmul.mubr.f32.gmra.mrb[50].mxu1 %v2127_v53 }
 0x9e2   : > { %3801 = vmatpush3.bf16.msra.mxu1 %v3778_v46  ;;  %3471 = vmatprep.mubr.msk.f32.mxu1 %vm4344_vm0, %v4345_v1 }
 0x9e3   : > { %3794 = vmatprep.subr.bf16.mxu1 %v4343_v0 }
 0x9e6   : > { %3802 = vmatpush3.bf16.msra.mxu1 %v3781_v50 }
 0x9e7   : > { %3795 = vmatprep.subr.bf16.mxu1 %v4343_v0 }
 0x9ea   : > { %3803 = vmatpush3.bf16.msra.mxu1 %v3784_v57 }
 0x9eb   : > { %3796 = vmatprep.subr.bf16.mxu1 %v4343_v0 }
 0x9ee   : > { %3804 = vmatpush3.bf16.msra.mxu1 %v3787_v33 }
 0xaa4   : > { %v2211_v61 = vpop.f32.mrb[42].mxu1 }
 0xaa5   : > { %v2235_v20 = vadd.f32 %v2211_v61, %v5066_v9  ;;  %v3417_v62 = vpop.f32.mrb[43].mxu1 }
 0xaa7   : > { %v2248_v3 = vadd.f32 %v2621_v18, %v2235_v20 }
 0xaa8   : > { %v2216_v22 = vpop.f32.mrb[44].mxu1 }
 0xaa9   : > { %v2253_v5 = vmax.f32 %v2248_v3, 0.0  ;;  %v2236_v6 = vadd.f32 %v2216_v22, %v5070_v56  ;;  %v3420_v26 = vpop.f32.mrb[45].mxu1 }
 0xaab   : > { %v2249_v8 = vadd.f32 %v2621_v18, %v2236_v6  ;;  %3463 = vmatmul.mubr.f32.vlgmr.msra.gmra.mrb[52].mxu0 %v2253_v5 }
 0xaac   : > { %v2221_v10 = vpop.f32.mrb[46].mxu1  ;;  %3465 = vmatprep.mubr.msk.f32.mxu0 %vm4344_vm0, %v4345_v1 }
 0xaad   : > { %v2254_v0 = vmax.f32 %v2249_v8, 0.0  ;;  %v2237_v11 = vadd.f32 %v2221_v10, %v5076_v60  ;;  %v3423_v30 = vpop.f32.mrb[47].mxu1 }
 0xaaf   : > { %v2250_v12 = vadd.f32 %v2621_v18, %v2237_v11  ;;  %3466 = vmatmul.mubr.f32.gmra.mrb[54].mxu0 %v2254_v0 }
 0xab0   : > { %v2226_v9 = vpop.f32.mrb[48].mxu1  ;;  %3468 = vmatprep.mubr.msk.f32.mxu0 %vm4344_vm0, %v4345_v1 }
 0xab1   : > { %v2255_v25 = vmax.f32 %v2250_v12, 0.0  ;;  %v2238_v56 = vadd.f32 %v2226_v9, %v5082_v63  ;;  %v3426_v2 = vpop.f32.mrb[49].mxu1 }
 0xab3   : > { %v2251_v14 = vadd.f32 %v2621_v18, %v2238_v56  ;;  %3469 = vmatmul.mubr.f32.gmra.mrb[56].mxu0 %v2255_v25 }
 0xab4   : > { %v2231_v15 = vpop.f32.mrb[50].mxu1 }
 0xab5   : > { %v2256_v17 = vmax.f32 %v2251_v14, 0.0  ;;  %v2239_v40 = vadd.f32 %v2231_v15, %v5088_v7  ;;  %v3429_v19 = vpop.f32.mrb[51].mxu1 }
 0xab7   : > { %v2252_v60 = vadd.f32 %v2621_v18, %v2239_v40  ;;  %3472 = vmatmul.mubr.f32.vlgmr.msra.gmra.mrb[52].mxu1 %v2256_v17 }
 0xab8   : > { %3474 = vmatprep.mubr.msk.f32.mxu1 %vm4344_vm0, %v4345_v1 }
 0xab9   : > { %v2257_v42 = vmax.f32 %v2252_v60, 0.0 }
 0xabb   : > { %3475 = vmatmul.mubr.f32.gmra.mrb[54].mxu1 %v2257_v42 }
 0xb7e   : > { %v2347_v63 = vpop.f32.mrb[52].mxu0 }
 0xb7f   : > { %v2348_v7 = vadd.f32 %v2622_v21, %v2347_v63  ;;  %v3464_v38 = vpop.f32.mrb[53].mxu0 }
 0xb81   : > { %2372 = vst.msk [vmem:[%s703_s21] sm:$0xff] %vm2371_vm1, %v2348_v7 }
 0xb82   : > { %v2352_v23 = vpop.f32.mrb[54].mxu0 }
 0xb83   : > { %v2353_v45 = vadd.f32 %v2622_v21, %v2352_v23  ;;  %v3467_v1 = vpop.f32.mrb[55].mxu0 }
 0xb85   : > { %2373 = vst.msk [vmem:[%s703_s21 + $0x8] sm:$0xff] %vm2371_vm1, %v2353_v45 }
 0xb86   : > { %v2357_v46 = vpop.f32.mrb[56].mxu0 }
 0xb87   : > { %v2358_v24 = vadd.f32 %v2622_v21, %v2357_v46  ;;  %v3470_v27 = vpop.f32.mrb[57].mxu0 }
 0xb89   : > { %2374 = vst.msk [vmem:[%s703_s21 + $0x10] sm:$0xff] %vm2371_vm1, %v2358_v24 }
 0xb8a   : > { %v2362_v50 = vpop.f32.mrb[52].mxu1 }
 0xb8b   : > { %v2363_v28 = vadd.f32 %v2622_v21, %v2362_v50  ;;  %v3473_v29 = vpop.f32.mrb[53].mxu1 }
 0xb8d   : > { %2375 = vst.msk [vmem:[%s703_s21 + $0x18] sm:$0xff] %vm2371_vm1, %v2363_v28 }
 0xb8e   : > { %v2367_v54 = vpop.f32.mrb[54].mxu1 }
 0xb8f   : > { %v2368_v31 = vadd.f32 %v2622_v21, %v2367_v54  ;;  %v3476_v32 = vpop.f32.mrb[55].mxu1 }
 0xb91   : > { %2376 = vst.msk [vmem:[%s703_s21 + $0x20] sm:$0xff] %vm2371_vm1, %v2368_v31 }
 0xb92 PF: > { %s33_s23 = sadd.s32 1, %s4327_s23   ;;  %s5266_s18 = smov %s4311_s19 }
 0xb93   : > { %p30_p5 = scmp.ge.s32.totalorder %s33_s23, 4   ;;  %s5267_s19 = smov %s4315_s20 }
 0xb94   : > { %s5268_s20 = smov %s4693_s1  ;;  %s5269_s21 = smov %s4323_s22 }
 0xb95   : > { %s5270_s22 = smov %s5272_s26  ;;  %32 = sbr.rel (!%p30_p5) target bundleno = 18 (0x12), region = 178 }
 0xb9c   :  { %2407 = vsyncpa [#allocation3], 1 }
 0xb9d   :  { %2409 = vsyncpa [#allocation3 + $0x1], 1 }
 0xb9e   :  { %2410 = vsyncpa [#allocation5], 1 }
 0xb9f   :  { %2411 = vsyncpa [#allocation8], 1 }
 0xba0   :  { %2412 = vsyncpa [#allocation11], 1 }
 0xba1   :  { %2413 = vsyncpa [#allocation14], 1 }
 0xba2   :  { %2414 = vsyncpa [#allocation17], 1 }

</bundles_post_ra>
